<compile_context>
chip_gen: v7x
topology: tpu7x:2x2x1
jax: 0.10.0
libtpu: 0.0.40
codegen_flags: <defaults>
</compile_context>

<pallas_src>
import jax
import jax.numpy as jnp
from jax.experimental import pallas as pl
from jax.experimental.pallas import tpu as pltpu

EPS = 1e-5
VMEM_LIMIT = 32 * 1024 * 1024
TN_CAP = 512  # point-tile rows: multiple of 256 (v6e MXU), <=2048 f32 rows (v7x VMEM)


# ---------------------------------------------------------------------------
# Kernels
# ---------------------------------------------------------------------------
def conv1_stats_kernel(x_ref, w_ref, b_ref, y_ref, sum_ref, ssq_ref):
    """Layer 1: y = x @ W(+bias) with Cin tiny (3) -> VPU broadcast FMAs (no MXU, no pad).
    Also accumulates per-batch per-channel sum / sum^2 for BN1 batch stats."""
    t = pl.program_id(1)
    x = x_ref[0]          # (TN, Cin) f32
    w = w_ref[0]          # (Cin, 64) f32 (per-batch folded weight for the encoder branch)
    cin = x.shape[1]

    y = x[:, 0:1] * w[0:1, :]
    for k in range(1, cin):
        y = y + x[:, k:k + 1] * w[k:k + 1, :]
    y = y + b_ref[...]                       # (TN, 64) f32, pre-BN
    y_ref[0] = y

    @pl.when(t == 0)
    def _():
        sum_ref[...] = jnp.zeros(sum_ref.shape, sum_ref.dtype)
        ssq_ref[...] = jnp.zeros(ssq_ref.shape, ssq_ref.dtype)

    sum_ref[0] += jnp.sum(y, axis=0, keepdims=True)
    ssq_ref[0] += jnp.sum(y * y, axis=0, keepdims=True)


def bn_relu_conv_stats_kernel(y_ref, sc_ref, sh_ref, w_ref, b_ref,
                              o_ref, sum_ref, ssq_ref):
    """Normalize(prev layer, f32) -> ReLU -> conv (bf16 MXU, f32 acc) -> write activation
    and accumulate per-batch moments for the next BN."""
    t = pl.program_id(1)
    h = jnp.maximum(y_ref[0] * sc_ref[...] + sh_ref[...], 0.0)        # f32
    y = jnp.dot(h.astype(jnp.bfloat16), w_ref[...],
                preferred_element_type=jnp.float32) + b_ref[...]      # (TN, Cout) f32
    o_ref[0] = y

    @pl.when(t == 0)
    def _():
        sum_ref[...] = jnp.zeros(sum_ref.shape, sum_ref.dtype)
        ssq_ref[...] = jnp.zeros(ssq_ref.shape, ssq_ref.dtype)

    sum_ref[0] += jnp.sum(y, axis=0, keepdims=True)
    ssq_ref[0] += jnp.sum(y * y, axis=0, keepdims=True)


def bn_relu_conv_pool_kernel(y_ref, sc_ref, sh_ref, w_ref, b_ref,
                             mx_ref, mn_ref, sum_ref, ssq_ref):
    """Normalize(prev) -> ReLU -> conv3 (bf16 MXU) and reduce: per-batch max/min/sum/sum^2.
    The (TN, 1024) activation never leaves VMEM; BN3 affine + global max applied outside."""
    t = pl.program_id(1)
    h = jnp.maximum(y_ref[0] * sc_ref[...] + sh_ref[...], 0.0)
    y = jnp.dot(h.astype(jnp.bfloat16), w_ref[...],
                preferred_element_type=jnp.float32) + b_ref[...]      # (TN, 1024) f32

    @pl.when(t == 0)
    def _():
        mx_ref[...] = jnp.full(mx_ref.shape, -jnp.inf, mx_ref.dtype)
        mn_ref[...] = jnp.full(mn_ref.shape, jnp.inf, mn_ref.dtype)
        sum_ref[...] = jnp.zeros(sum_ref.shape, sum_ref.dtype)
        ssq_ref[...] = jnp.zeros(ssq_ref.shape, ssq_ref.dtype)

    mx_ref[0] = jnp.maximum(mx_ref[0], jnp.max(y, axis=0, keepdims=True))
    mn_ref[0] = jnp.minimum(mn_ref[0], jnp.min(y, axis=0, keepdims=True))
    sum_ref[0] += jnp.sum(y, axis=0, keepdims=True)
    ssq_ref[0] += jnp.sum(y * y, axis=0, keepdims=True)


def _bn_train(y, gamma, beta):
    """BatchNorm1d training mode over the row axis: batch stats, biased variance, f32."""
    mu = jnp.mean(y, axis=0, keepdims=True)
    var = jnp.mean((y - mu) ** 2, axis=0, keepdims=True)
    return (y - mu) * jax.lax.rsqrt(var + EPS) * gamma + beta


def fc_head_kernel(g_ref, w1, b1, g1, be1, w2, b2, g2, be2, w3, b3, iden, out_ref):
    """STN head: fc1->bn->relu, fc2->bn->relu, fc3, + flattened identity.
    Matmuls in bf16 (weight-DMA bound at small B), BN/ReLU in f32."""
    x = g_ref[...]

    def layer(h, w, b, gm, bt):
        y = jnp.dot(h.astype(jnp.bfloat16), w[...],
                    preferred_element_type=jnp.float32) + b[...]
        return jnp.maximum(_bn_train(y, gm[...], bt[...]), 0.0)

    h = layer(x, w1, b1, g1, be1)            # (B, 512)
    h = layer(h, w2, b2, g2, be2)            # (B, 256)
    out_ref[...] = (jnp.dot(h.astype(jnp.bfloat16), w3[...],
                            preferred_element_type=jnp.float32)
                    + b3[...] + iden[...])   # (B, 128) lane-dense (9 valid)


# ---------------------------------------------------------------------------
# Wrappers
# ---------------------------------------------------------------------------
_CP_TILED = pltpu.CompilerParams(
    dimension_semantics=("parallel", "arbitrary"),
    vmem_limit_bytes=VMEM_LIMIT)


def _choose_tile(n, cap=TN_CAP):
    for t in (2048, 1024, 512, 256, 128, 64, 32, 16, 8):
        if t <= cap and n % t == 0:
            return t
    return n  # tiny / odd N: use the full point axis as one tile


def _bn_scale_shift(sum_b, ssq_b, gamma, beta, count):
    """Combine per-batch moment accumulators (f32) into the BN affine (scale, shift)."""
    s = jnp.sum(sum_b, axis=0)               # (1, C)
    sq = jnp.sum(ssq_b, axis=0)               # (1, C)
    mu = s / count
    var = jnp.maximum(sq / count - mu * mu, 0.0)   # biased variance
    scale = gamma * jax.lax.rsqrt(var + EPS)
    shift = beta - mu * scale
    return scale, shift


def shared_mlp_max(x_nlc, conv_params, relu_last, w1_per_batch=None):
    """conv1->bn1->relu, conv2->bn2->relu, conv3->bn3(->relu?), max over points.
    x_nlc: (B, N, Cin).  Returns (B, 1024)."""
    B, N, Cin = x_nlc.shape
    tn = _choose_tile(N)
    T = N // tn
    count = float(B * N)
    (W1, b1, g1, be1), (W2, b2, g2, be2), (W3, b3, g3, be3) = conv_params
    if w1_per_batch is None:
        w1_per_batch = jnp.broadcast_to(W1[None], (B,) + W1.shape)

    # ---- layer 1 (conv + moments) ----
    y1, s1, q1 = pl.pallas_call(
        conv1_stats_kernel,
        grid=(B, T),
        in_specs=[
            pl.BlockSpec((1, tn, Cin), lambda b, t: (b, t, 0)),
            pl.BlockSpec((1, Cin, 64), lambda b, t: (b, 0, 0)),
            pl.BlockSpec((1, 64), lambda b, t: (0, 0)),
        ],
        out_specs=[
            pl.BlockSpec((1, tn, 64), lambda b, t: (b, t, 0)),
            pl.BlockSpec((1, 1, 64), lambda b, t: (b, 0, 0)),
            pl.BlockSpec((1, 1, 64), lambda b, t: (b, 0, 0)),
        ],
        out_shape=[
            jax.ShapeDtypeStruct((B, N, 64), jnp.float32),
            jax.ShapeDtypeStruct((B, 1, 64), jnp.float32),
            jax.ShapeDtypeStruct((B, 1, 64), jnp.float32),
        ],
        compiler_params=_CP_TILED,
    )(x_nlc, w1_per_batch, b1)
    sc1, sh1 = _bn_scale_shift(s1, q1, g1, be1, count)

    # ---- layer 2 (bn1+relu fused in, conv2 + moments) ----
    y2, s2, q2 = pl.pallas_call(
        bn_relu_conv_stats_kernel,
        grid=(B, T),
        in_specs=[
            pl.BlockSpec((1, tn, 64), lambda b, t: (b, t, 0)),
            pl.BlockSpec((1, 64), lambda b, t: (0, 0)),
            pl.BlockSpec((1, 64), lambda b, t: (0, 0)),
            pl.BlockSpec((64, 128), lambda b, t: (0, 0)),
            pl.BlockSpec((1, 128), lambda b, t: (0, 0)),
        ],
        out_specs=[
            pl.BlockSpec((1, tn, 128), lambda b, t: (b, t, 0)),
            pl.BlockSpec((1, 1, 128), lambda b, t: (b, 0, 0)),
            pl.BlockSpec((1, 1, 128), lambda b, t: (b, 0, 0)),
        ],
        out_shape=[
            jax.ShapeDtypeStruct((B, N, 128), jnp.float32),
            jax.ShapeDtypeStruct((B, 1, 128), jnp.float32),
            jax.ShapeDtypeStruct((B, 1, 128), jnp.float32),
        ],
        compiler_params=_CP_TILED,
    )(y1, sc1, sh1, W2.astype(jnp.bfloat16), b2)
    sc2, sh2 = _bn_scale_shift(s2, q2, g2, be2, count)

    # ---- layer 3 (bn2+relu fused in, conv3 + in-kernel pooling reductions) ----
    mx, mn, s3, q3 = pl.pallas_call(
        bn_relu_conv_pool_kernel,
        grid=(B, T),
        in_specs=[
            pl.BlockSpec((1, tn, 128), lambda b, t: (b, t, 0)),
            pl.BlockSpec((1, 128), lambda b, t: (0, 0)),
            pl.BlockSpec((1, 128), lambda b, t: (0, 0)),
            pl.BlockSpec((128, 1024), lambda b, t: (0, 0)),
            pl.BlockSpec((1, 1024), lambda b, t: (0, 0)),
        ],
        out_specs=[pl.BlockSpec((1, 1, 1024), lambda b, t: (b, 0, 0))] * 4,
        out_shape=[jax.ShapeDtypeStruct((B, 1, 1024), jnp.float32)] * 4,
        compiler_params=_CP_TILED,
    )(y2, sc2, sh2, W3.astype(jnp.bfloat16), b3)

    # BN3 is a per-channel affine; max over points commutes with it (pick max or min by
    # the sign of the scale), and with the optional ReLU (monotone).  Tiny (B,1024) math.
    sc3, sh3 = _bn_scale_shift(s3, q3, g3, be3, count)
    mx = mx[:, 0, :]
    mn = mn[:, 0, :]
    pooled = jnp.where(sc3 >= 0.0, mx * sc3 + sh3, mn * sc3 + sh3)
    if relu_last:
        pooled = jnp.maximum(pooled, 0.0)
    return pooled


def stn_fc_head(gfeat, fc_params):
    """gfeat: (B, 1024) -> (B, 9) = fc3(relu(bn5(fc2(relu(bn4(fc1)))))) + I."""
    B = gfeat.shape[0]
    (w1, b1, g1, be1), (w2, b2, g2, be2), (w3, b3) = fc_params
    out_dim = w3.shape[1]        # 9
    pad_to = 128                 # lane-dense output store; sliced back outside
    w3p = jnp.pad(w3, ((0, 0), (0, pad_to - out_dim))).astype(jnp.bfloat16)
    b3p = jnp.pad(b3, ((0, 0), (0, pad_to - out_dim)))
    iden = jnp.pad(jnp.eye(3, dtype=jnp.float32).reshape(1, 9),
                   ((0, 0), (0, pad_to - out_dim)))
    args = [gfeat,
            w1.astype(jnp.bfloat16), b1, g1, be1,
            w2.astype(jnp.bfloat16), b2, g2, be2,
            w3p, b3p, iden]

    def _const_idx(n):
        return lambda i: (0,) * n

    out = pl.pallas_call(
        fc_head_kernel,
        grid=(1,),
        in_specs=[pl.BlockSpec(a.shape, _const_idx(a.ndim)) for a in args],
        out_specs=pl.BlockSpec((B, pad_to), lambda i: (0, 0)),
        out_shape=jax.ShapeDtypeStruct((B, pad_to), jnp.float32),
        compiler_params=pltpu.CompilerParams(
            dimension_semantics=("arbitrary",), vmem_limit_bytes=VMEM_LIMIT),
    )(*args)
    return out[:, :out_dim]


# ---------------------------------------------------------------------------
# PointNetEncoder forward
# ---------------------------------------------------------------------------
def pointnet_encoder(x, params):
    """x: (B, D, N) float32 (PyTorch NCW).  Returns (global_feat, trans, trans_feat)."""
    B, D, N = x.shape
    assert D == 3  # TODO(synk): D>3 feature-split path not implemented (default channel=3)
    x_nlc = jnp.transpose(x, (0, 2, 1))                               # (B, N, 3)

    # --- STN3d: predict 3x3 input transform ---
    g = shared_mlp_max(x_nlc, params["stn"]["conv"], relu_last=True)  # (B, 1024)
    trans = stn_fc_head(g, params["stn"]["fc"]).reshape(B, 3, 3)      # includes +I

    # --- fold input transform into encoder conv1: (x @ trans) @ W1 = x @ (trans @ W1) ---
    W1 = params["enc"]["conv"][0][0]                                  # (3, 64)
    w1_fold = jnp.einsum("bij,jk->bik", trans, W1)                    # (B, 3, 64), trivial

    # --- shared MLP + global max pool (conv3->bn3 has no relu) ---
    feat = shared_mlp_max(x_nlc, params["enc"]["conv"],
                          relu_last=False, w1_per_batch=w1_fold)      # (B, 1024)

    trans_feat = None  # feature_transform=False
    return feat, trans, trans_feat


# ---------------------------------------------------------------------------
# Deterministic parameter initialization (synthetic, no checkpoint)
# ---------------------------------------------------------------------------
def init_params(key):
    keys = iter(jax.random.split(key, 64))

    def nrm(shape, scale=0.1):
        return scale * jax.random.normal(next(keys), shape, dtype=jnp.float32)

    def conv_stack(cin):
        layers = []
        for ci, co in [(cin, 64), (64, 128), (128, 1024)]:
            layers.append((nrm((ci, co)),            # conv weight (Cin, Cout)
                           nrm((1, co)),             # conv bias
                           1.0 + nrm((1, co)),       # bn gamma
                           nrm((1, co))))            # bn beta
        return layers

    def fc_stack():
        fcs = []
        for ci, co in [(1024, 512), (512, 256)]:
            fcs.append((nrm((ci, co)), nrm((1, co)),
                        1.0 + nrm((1, co)), nrm((1, co))))
        fcs.append((nrm((256, 9)), nrm((1, 9))))     # fc3
        return fcs

    return {"stn": {"conv": conv_stack(3), "fc": fc_stack()},
            "enc": {"conv": conv_stack(3)}}


if __name__ == "__main__":
    key = jax.random.PRNGKey(0)
    k_in, k_par = jax.random.split(key)

    B, C, N = 2, 3, 1024          # N=1024 -> 2 point-tiles of 512: exercises accumulators
    x = jax.random.normal(k_in, (B, C, N), dtype=jnp.float32)
    params = init_params(k_par)

    feat, trans, trans_feat = pointnet_encoder(x, params)
    jax.block_until_ready((feat, trans))

    assert feat.shape == (B, 1024) and feat.dtype == jnp.float32
    assert trans.shape == (B, 3, 3) and trans.dtype == jnp.float32
    assert trans_feat is None
    assert bool(jnp.isfinite(feat).all()) and bool(jnp.isfinite(trans).all())
    print("KERNEL_OK")
</pallas_src>

<mosaic_0001>
module attributes {stable_mosaic.version = 11 : i64} {
  func.func @conv1_stats_kernel(%arg0: i32, %arg1: i32, %arg2: memref<1x512x3xf32, #tpu.memory_space<vmem>>, %arg3: memref<1x3x64xf32, #tpu.memory_space<vmem>>, %arg4: memref<1x64xf32, #tpu.memory_space<vmem>>, %arg5: memref<1x512x64xf32, #tpu.memory_space<vmem>>, %arg6: memref<1x1x64xf32, #tpu.memory_space<vmem>>, %arg7: memref<1x1x64xf32, #tpu.memory_space<vmem>>) attributes {dimension_semantics = [#tpu.dimension_semantics<parallel>, #tpu.dimension_semantics<arbitrary>], iteration_bounds = array<i64: 2, 2>, scalar_prefetch = 0 : i64, scratch_operands = 0 : i64, tpu.core_type = #tpu.core_type<tc>, window_params = [{transform_indices = @transform_0, window_bounds = array<i64: 1, 512, 3>}, {transform_indices = @transform_1, window_bounds = array<i64: 1, 3, 64>}, {pipeline_mode = #tpu.pipeline_mode<synchronous>, transform_indices = @transform_2, window_bounds = array<i64: 1, 64>}, {transform_indices = @transform_3, window_bounds = array<i64: 1, 512, 64>}, {transform_indices = @transform_4, window_bounds = array<i64: 1, 1, 64>}, {transform_indices = @transform_5, window_bounds = array<i64: 1, 1, 64>}]} {
    %c0 = arith.constant 0 : index
    %c0_0 = arith.constant 0 : index
    %c0_1 = arith.constant 0 : index
    %0 = vector.load %arg2[%c0, %c0_0, %c0_1] : memref<1x512x3xf32, #tpu.memory_space<vmem>>, vector<1x512x3xf32>
    %1 = vector.shape_cast %0 : vector<1x512x3xf32> to vector<512x3xf32>
    %c0_2 = arith.constant 0 : index
    %c0_3 = arith.constant 0 : index
    %c0_4 = arith.constant 0 : index
    %2 = vector.load %arg3[%c0_2, %c0_3, %c0_4] : memref<1x3x64xf32, #tpu.memory_space<vmem>>, vector<1x3x64xf32>
    %3 = vector.shape_cast %2 : vector<1x3x64xf32> to vector<3x64xf32>
    %4 = vector.extract_strided_slice %1 {offsets = [0, 0], sizes = [512, 1], strides = [1, 1]} : vector<512x3xf32> to vector<512x1xf32>
    %5 = vector.extract_strided_slice %3 {offsets = [0, 0], sizes = [1, 64], strides = [1, 1]} : vector<3x64xf32> to vector<1x64xf32>
    %6 = vector.broadcast %4 : vector<512x1xf32> to vector<512x64xf32>
    %7 = vector.broadcast %5 : vector<1x64xf32> to vector<512x64xf32>
    %8 = arith.mulf %6, %7 : vector<512x64xf32>
    %9 = vector.extract_strided_slice %1 {offsets = [0, 1], sizes = [512, 1], strides = [1, 1]} : vector<512x3xf32> to vector<512x1xf32>
    %10 = vector.extract_strided_slice %3 {offsets = [1, 0], sizes = [1, 64], strides = [1, 1]} : vector<3x64xf32> to vector<1x64xf32>
    %11 = vector.broadcast %9 : vector<512x1xf32> to vector<512x64xf32>
    %12 = vector.broadcast %10 : vector<1x64xf32> to vector<512x64xf32>
    %13 = arith.mulf %11, %12 : vector<512x64xf32>
    %14 = arith.addf %8, %13 : vector<512x64xf32>
    %15 = vector.extract_strided_slice %1 {offsets = [0, 2], sizes = [512, 1], strides = [1, 1]} : vector<512x3xf32> to vector<512x1xf32>
    %16 = vector.extract_strided_slice %3 {offsets = [2, 0], sizes = [1, 64], strides = [1, 1]} : vector<3x64xf32> to vector<1x64xf32>
    %17 = vector.broadcast %15 : vector<512x1xf32> to vector<512x64xf32>
    %18 = vector.broadcast %16 : vector<1x64xf32> to vector<512x64xf32>
    %19 = arith.mulf %17, %18 : vector<512x64xf32>
    %20 = arith.addf %14, %19 : vector<512x64xf32>
    %c0_5 = arith.constant 0 : index
    %c0_6 = arith.constant 0 : index
    %21 = vector.load %arg4[%c0_5, %c0_6] : memref<1x64xf32, #tpu.memory_space<vmem>>, vector<1x64xf32>
    %22 = vector.broadcast %21 : vector<1x64xf32> to vector<512x64xf32>
    %23 = arith.addf %20, %22 : vector<512x64xf32>
    %c0_7 = arith.constant 0 : index
    %c0_8 = arith.constant 0 : index
    %c0_9 = arith.constant 0 : index
    %24 = vector.load %arg5[%c0_7, %c0_8, %c0_9] : memref<1x512x64xf32, #tpu.memory_space<vmem>>, vector<1x512x64xf32>
    %25 = vector.shape_cast %24 : vector<1x512x64xf32> to vector<512x64xf32>
    %26 = vector.shape_cast %23 : vector<512x64xf32> to vector<1x512x64xf32>
    tpu.vector_store %arg5[%c0_7, %c0_8, %c0_9], %26 {strides = array<i32>} : memref<1x512x64xf32, #tpu.memory_space<vmem>>, vector<1x512x64xf32>,
    %c0_i32 = arith.constant 0 : i32
    %27 = arith.cmpi eq, %arg1, %c0_i32 : i32
    %28 = arith.extui %27 : i1 to i32
    %c0_i32_10 = arith.constant 0 : i32
    %29 = arith.cmpi ne, %28, %c0_i32_10 : i32
    scf.if %29 {
      %cst_24 = arith.constant 0.000000e+00 : f32
      %47 = vector.broadcast %cst_24 : f32 to vector<1x1x64xf32>
      %c0_25 = arith.constant 0 : index
      %c0_26 = arith.constant 0 : index
      %c0_27 = arith.constant 0 : index
      %48 = vector.load %arg6[%c0_25, %c0_26, %c0_27] : memref<1x1x64xf32, #tpu.memory_space<vmem>>, vector<1x1x64xf32>
      tpu.vector_store %arg6[%c0_25, %c0_26, %c0_27], %47 {strides = array<i32>} : memref<1x1x64xf32, #tpu.memory_space<vmem>>, vector<1x1x64xf32>,
      %cst_28 = arith.constant 0.000000e+00 : f32
      %49 = vector.broadcast %cst_28 : f32 to vector<1x1x64xf32>
      %c0_29 = arith.constant 0 : index
      %c0_30 = arith.constant 0 : index
      %c0_31 = arith.constant 0 : index
      %50 = vector.load %arg7[%c0_29, %c0_30, %c0_31] : memref<1x1x64xf32, #tpu.memory_space<vmem>>, vector<1x1x64xf32>
      tpu.vector_store %arg7[%c0_29, %c0_30, %c0_31], %49 {strides = array<i32>} : memref<1x1x64xf32, #tpu.memory_space<vmem>>, vector<1x1x64xf32>,
    } else {
    }
    %c0_11 = arith.constant 0 : index
    %c0_12 = arith.constant 0 : index
    %c0_13 = arith.constant 0 : index
    %30 = vector.load %arg6[%c0_11, %c0_12, %c0_13] : memref<1x1x64xf32, #tpu.memory_space<vmem>>, vector<1x1x64xf32>
    %31 = vector.shape_cast %30 : vector<1x1x64xf32> to vector<1x64xf32>
    %cst = arith.constant dense<0.000000e+00> : vector<64xf32>
    %32 = vector.multi_reduction <add>, %23, %cst [0] : vector<512x64xf32> to vector<64xf32>
    %33 = vector.shape_cast %32 : vector<64xf32> to vector<1x64xf32>
    %34 = arith.addf %31, %33 : vector<1x64xf32>
    %c0_14 = arith.constant 0 : index
    %c0_15 = arith.constant 0 : index
    %c0_16 = arith.constant 0 : index
    %35 = vector.load %arg6[%c0_14, %c0_15, %c0_16] : memref<1x1x64xf32, #tpu.memory_space<vmem>>, vector<1x1x64xf32>
    %36 = vector.shape_cast %35 : vector<1x1x64xf32> to vector<1x64xf32>
    %37 = vector.shape_cast %34 : vector<1x64xf32> to vector<1x1x64xf32>
    tpu.vector_store %arg6[%c0_14, %c0_15, %c0_16], %37 {strides = array<i32>} : memref<1x1x64xf32, #tpu.memory_space<vmem>>, vector<1x1x64xf32>,
    %c0_17 = arith.constant 0 : index
    %c0_18 = arith.constant 0 : index
    %c0_19 = arith.constant 0 : index
    %38 = vector.load %arg7[%c0_17, %c0_18, %c0_19] : memref<1x1x64xf32, #tpu.memory_space<vmem>>, vector<1x1x64xf32>
    %39 = vector.shape_cast %38 : vector<1x1x64xf32> to vector<1x64xf32>
    %40 = arith.mulf %23, %23 : vector<512x64xf32>
    %cst_20 = arith.constant dense<0.000000e+00> : vector<64xf32>
    %41 = vector.multi_reduction <add>, %40, %cst_20 [0] : vector<512x64xf32> to vector<64xf32>
    %42 = vector.shape_cast %41 : vector<64xf32> to vector<1x64xf32>
    %43 = arith.addf %39, %42 : vector<1x64xf32>
    %c0_21 = arith.constant 0 : index
    %c0_22 = arith.constant 0 : index
    %c0_23 = arith.constant 0 : index
    %44 = vector.load %arg7[%c0_21, %c0_22, %c0_23] : memref<1x1x64xf32, #tpu.memory_space<vmem>>, vector<1x1x64xf32>
    %45 = vector.shape_cast %44 : vector<1x1x64xf32> to vector<1x64xf32>
    %46 = vector.shape_cast %43 : vector<1x64xf32> to vector<1x1x64xf32>
    tpu.vector_store %arg7[%c0_21, %c0_22, %c0_23], %46 {strides = array<i32>} : memref<1x1x64xf32, #tpu.memory_space<vmem>>, vector<1x1x64xf32>,
    return
  }
  func.func @transform_0(%arg0: i32, %arg1: i32) -> (i32, i32, i32) {
    %c0_i32 = arith.constant 0 : i32
    %c0_i32_0 = arith.constant 0 : i32
    return %arg0, %arg1, %c0_i32 : i32, i32, i32
  }
  func.func @transform_1(%arg0: i32, %arg1: i32) -> (i32, i32, i32) {
    %c0_i32 = arith.constant 0 : i32
    %c0_i32_0 = arith.constant 0 : i32
    %c0_i32_1 = arith.constant 0 : i32
    return %arg0, %c0_i32, %c0_i32_0 : i32, i32, i32
  }
  func.func @transform_2(%arg0: i32, %arg1: i32) -> (i32, i32) {
    %c0_i32 = arith.constant 0 : i32
    %c0_i32_0 = arith.constant 0 : i32
    %c0_i32_1 = arith.constant 0 : i32
    return %c0_i32, %c0_i32_0 : i32, i32
  }
  func.func @transform_3(%arg0: i32, %arg1: i32) -> (i32, i32, i32) {
    %c0_i32 = arith.constant 0 : i32
    %c0_i32_0 = arith.constant 0 : i32
    return %arg0, %arg1, %c0_i32 : i32, i32, i32
  }
  func.func @transform_4(%arg0: i32, %arg1: i32) -> (i32, i32, i32) {
    %c0_i32 = arith.constant 0 : i32
    %c0_i32_0 = arith.constant 0 : i32
    %c0_i32_1 = arith.constant 0 : i32
    return %arg0, %c0_i32, %c0_i32_0 : i32, i32, i32
  }
  func.func @transform_5(%arg0: i32, %arg1: i32) -> (i32, i32, i32) {
    %c0_i32 = arith.constant 0 : i32
    %c0_i32_0 = arith.constant 0 : i32
    %c0_i32_1 = arith.constant 0 : i32
    return %arg0, %c0_i32, %c0_i32_0 : i32, i32, i32
  }
}

</mosaic_0001>

<bundles_post_ra>
// kernel: tpu_custom_call.1
= control target key start
LH: loop header
LB: loop body
LE: loop exit
PB: predicated region body
PF: predicated region fallthrough
CT: control target
= control target key end

     0   :  { %11 = vsyncpa [#allocation3], 0  ;;  %s4351_s0 = inlined_call_operand.vmem [shape: f32[2,1024,3], index: 0, kind: input, shape index: {}]   ;;  %s4352_s1 = inlined_call_operand.vmem [shape: f32[2,3,64], index: 1, kind: input, shape index: {}]   ;;  %s4353_s2 = inlined_call_operand.vmem [shape: f32[1,64], index: 2, kind: input, shape index: {}]   ;;  %s4354_s3 = inlined_call_operand.vmem [shape: f32[2,1024,64], index: 3, kind: output, shape index: {0}]   ;;  %s4355_s4 = inlined_call_operand.hbm [shape: f32[2,1,64], index: 4, kind: output, shape index: {1}]   ;;  %s4356_s5 = inlined_call_operand.hbm [shape: f32[2,1,64], index: 5, kind: output, shape index: {2}]  }
   0x1   :  { %13 = vsyncpa [#allocation3 + $0x1], 0 }
   0x2   :  { %14 = vsyncpa [#allocation5], 0 }
   0x3   :  { %16 = vsyncpa [#allocation5 + $0x1], 0  ;;  %s2469_s18 = smov 0   ;;  %s2471_s19 = smov 0  }
   0x4   :  { %s2473_s20 = smov 0   ;;  %s2475_s21 = smov 0  }
   0x5   :  { %s2477_s22 = smov 0   ;;  %s2479_s23 = smov 0  }
   0x6   :  { %s2481_s24 = smov 0   ;;  %s2483_s25 = smov 0  }
   0x7 LB: > { %s2201_s26 = sadd.s32 4294967295, %s2431_s25   ;;  %s2202_s27 = sadd.s32 4294967294, %s2431_s25   ;;  %s2431_s25 = sphi %s2483_s25, %s22_s25   ;;  %s2427_s24 = sphi %s2481_s24, %s4640_s24   ;;  %s2423_s23 = sphi %s2479_s23, %s4639_s23   ;;  %s2419_s22 = sphi %s2477_s22, %s4638_s22   ;;  %s2415_s21 = sphi %s2475_s21, %s4637_s21   ;;  %s2411_s20 = sphi %s2473_s20, %s4636_s20   ;;  %s2407_s19 = sphi %s2471_s19, %s4635_s19   ;;  %s2403_s18 = sphi %s2469_s18, %s4634_s18  }
   0x8   : > { %s31_s28 = sadd.s32 1, %s2423_s23  ;;  %s34_s29 = sadd.s32 1, %s2427_s24 }
   0x9   : > { %p32_p0 = scmp.ge.s32.totalorder %s31_s28, 2  ;;  %p154_p1 = scmp.ne.s32.totalorder %s2411_s20, %s2407_s19 }
   0xa   : > { %p155_p2 = scmp.eq.s32.totalorder %s2201_s26, 3  ;;  %p160_p4 = scmp.ne.s32.totalorder %s2407_s19, %s2403_s18 }
   0xb   : > { %s4642_s28 = smov (%p32_p0, %s31_s28), 0  ;;  %s4644_s29 = smov (!%p32_p0, %s34_s29), %s2427_s24 }
   0xc   : > { %p2518_p3 = por %p155_p2, %p154_p1  ;;  %p36_p5 = scmp.ge.s32.totalorder %s4644_s29, 2 }
   0xd   : > { %p161_p6 = scmp.eq.s32.totalorder %s2202_s27, 3  ;;  %p2205_p7 = scmp.ge.s32.totalorder %s2431_s25, 1 }
   0xe   : > { %p228_p8 = scmp.lt.s32.totalorder %s2431_s25, 5  ;;  %s4646_s29 = smov (%p36_p5, %s4644_s29), 0 }
   0xf   : > { %p2528_p9 = por %p161_p6, %p160_p4  ;;  %s141_s7 = ssub.s32 %s2427_s24, %s4646_s29 }
  0x10   : > { %p229_p10 = pnand %p2205_p7, %p228_p8  ;;  %s144_s8 = sadd.s32 1, %s2411_s20 }
  0x11   : > { %p142_p11 = scmp.eq.s32.totalorder %s141_s7, 0 }
  0x12   : > { %232 = sbr.rel (%p229_p10) target bundleno = 758 (0x2f6), region = 32 }
  0x13   : > { %s2536_s9 = scalar_select %p142_p11, %s2411_s20, %s144_s8  }
  0x19   : > { %s2206_s10 = sshll.u32 %s2415_s21, 6  ;;  %p277_p12 = scmp.lt.s32.totalorder %s2419_s22, 1  ;;  %v2433_v0 = vmov 0   ;;  %vm1600_vm0 = vcmask 523264  }
  0x1a   : > { %2300 = vset.pattern.permute.xlu1 %v2433_v0  ;;  %2299 = vset.pattern.permute.xlu0 %v2433_v0  ;;  %p279_p13 = scmp.lt.s32.totalorder %s2206_s10, 127  ;;  %p2214_p0 = scmp.ne.s32.totalorder %s2415_s21, 0 }
  0x1b   : > { %s2541_s11 = scalar_select %p277_p12, %s2419_s22, 1 }
  0x1c   : > { %s4648_s10 = smov (!%p279_p13, %s2206_s10), 127  ;;  %vm1669_vm1 = vcmask (!%p2214_p0), 516096  }
  0x1d   : > { %s2207_s12 = sshll.u32 %s2541_s11, 7  ;;  %s2209_s26 = sshll.u32 %s2541_s11, 2 }
  0x1e   : > { %s2544_s13 = sadd.s32 %s2207_s12, %s4648_s10  ;;  %s289_s8 = scalar_lea.vmem %s4352_s1, %s2209_s26 }
  0x1f   : > { %s2208_s14 = sshll.u32 %s2544_s13, 3  ;;  %s3251_s13 = sand.u32 1, %s2407_s19  }
  0x20   : > { %s2552_s17 = scalar_lea.vmem %s4351_s0, %s2208_s14  ;;  %s3232_s16 = scalar_lea.vmem %s4354_s3, %s2208_s14 }
  0x21   : > { %v2555_v1 = vld [vmem:[%s2552_s17 + $0x10] sm:$0xff]  ;;  %v2558_v2 = vld [vmem:[%s2552_s17] sm:$0xff]  ;;  %v2563_v3 = vld [vmem:[%s2552_s17 + $0x18] sm:$0xff]  ;;  %s3924_s14 = scalar_lea.vmem [#allocation2], %s3251_s13 }
  0x22   : > { %377 = vperm.xlu1 %2300, %v2555_v1   ;;  %367 = vperm.xlu0 %2299, %v2558_v2   ;;  %v2566_v4 = vld [vmem:[%s2552_s17 + $0x8] sm:$0xff]  ;;  %v2574_v6 = vld [vmem:[%s2552_s17 + $0x20] sm:$0xff]  ;;  %v2579_v7 = vld [vmem:[%s2552_s17 + $0x38] sm:$0xff] }
  0x23   : > { %v2571_v5 = vld [vmem:[%s2552_s17 + $0x28] sm:$0xff]  ;;  %v2582_v8 = vld [vmem:[%s2552_s17 + $0x30] sm:$0xff]  ;;  %v2590_v10 = vld [vmem:[%s2552_s17 + $0x40] sm:$0xff] }
  0x24   : > { %v2587_v9 = vld [vmem:[%s2552_s17 + $0x48] sm:$0xff]  ;;  %v2595_v11 = vld [vmem:[%s2552_s17 + $0x58] sm:$0xff]  ;;  %v2598_v12 = vld [vmem:[%s2552_s17 + $0x50] sm:$0xff] }
  0x25   : > { %v2603_v13 = vld [vmem:[%s2552_s17 + $0x68] sm:$0xff]  ;;  %v2606_v14 = vld [vmem:[%s2552_s17 + $0x60] sm:$0xff]  ;;  %v2611_v15 = vld [vmem:[%s2552_s17 + $0x78] sm:$0xff] }
  0x26   : > { %382 = vperm.xlu1 %2300, %v2563_v3   ;;  %372 = vperm.xlu0 %2299, %v2566_v4   ;;  %v2614_v16 = vld [vmem:[%s2552_s17 + $0x70] sm:$0xff]  ;;  %v2619_v17 = vld [vmem:[%s2552_s17 + $0x88] sm:$0xff]  ;;  %v2622_v18 = vld [vmem:[%s2552_s17 + $0x80] sm:$0xff] }
  0x27   : > { %v2627_v19 = vld [vmem:[%s2552_s17 + $0x98] sm:$0xff]  ;;  %v2630_v20 = vld [vmem:[%s2552_s17 + $0x90] sm:$0xff]  ;;  %v2635_v21 = vld [vmem:[%s2552_s17 + $0xa8] sm:$0xff] }
  0x28   : > { %v2638_v22 = vld [vmem:[%s2552_s17 + $0xa0] sm:$0xff]  ;;  %v2643_v23 = vld [vmem:[%s2552_s17 + $0xb8] sm:$0xff]  ;;  %v2646_v24 = vld [vmem:[%s2552_s17 + $0xb0] sm:$0xff] }
  0x29   : > { %v2651_v25 = vld [vmem:[%s2552_s17 + $0xc8] sm:$0xff]  ;;  %v2654_v26 = vld [vmem:[%s2552_s17 + $0xc0] sm:$0xff]  ;;  %v2659_v27 = vld [vmem:[%s2552_s17 + $0xd8] sm:$0xff] }
  0x2a   : > { %392 = vperm.xlu1 %2300, %v2571_v5   ;;  %387 = vperm.xlu0 %2299, %v2574_v6   ;;  %v2662_v28 = vld [vmem:[%s2552_s17 + $0xd0] sm:$0xff]  ;;  %v2667_v29 = vld [vmem:[%s2552_s17 + $0xe8] sm:$0xff]  ;;  %v2670_v30 = vld [vmem:[%s2552_s17 + $0xe0] sm:$0xff] }
  0x2b   : > { %v2675_v31 = vld [vmem:[%s2552_s17 + $0xf8] sm:$0xff]  ;;  %v2678_v32 = vld [vmem:[%s2552_s17 + $0xf0] sm:$0xff]  ;;  %v2683_v33 = vld [vmem:[%s2552_s17 + $0x108] sm:$0xff] }
  0x2c   : > { %v2686_v34 = vld [vmem:[%s2552_s17 + $0x100] sm:$0xff]  ;;  %v2691_v35 = vld [vmem:[%s2552_s17 + $0x118] sm:$0xff]  ;;  %v2694_v36 = vld [vmem:[%s2552_s17 + $0x110] sm:$0xff] }
  0x2d   : > { %v2699_v37 = vld [vmem:[%s2552_s17 + $0x128] sm:$0xff]  ;;  %v2702_v38 = vld [vmem:[%s2552_s17 + $0x120] sm:$0xff]  ;;  %v2707_v39 = vld [vmem:[%s2552_s17 + $0x138] sm:$0xff] }
  0x2e   : > { %402 = vperm.xlu1 %2300, %v2579_v7   ;;  %397 = vperm.xlu0 %2299, %v2582_v8   ;;  %v2710_v40 = vld [vmem:[%s2552_s17 + $0x130] sm:$0xff]  ;;  %v2715_v41 = vld [vmem:[%s2552_s17 + $0x148] sm:$0xff]  ;;  %v2718_v42 = vld [vmem:[%s2552_s17 + $0x140] sm:$0xff] }
  0x2f   : > { %v2723_v43 = vld [vmem:[%s2552_s17 + $0x158] sm:$0xff]  ;;  %v2726_v44 = vld [vmem:[%s2552_s17 + $0x150] sm:$0xff]  ;;  %v2731_v45 = vld [vmem:[%s2552_s17 + $0x168] sm:$0xff] }
  0x30   : > { %v2734_v46 = vld [vmem:[%s2552_s17 + $0x160] sm:$0xff]  ;;  %v2739_v47 = vld [vmem:[%s2552_s17 + $0x178] sm:$0xff]  ;;  %v2742_v48 = vld [vmem:[%s2552_s17 + $0x170] sm:$0xff] }
  0x31   : > { %v2747_v49 = vld [vmem:[%s2552_s17 + $0x188] sm:$0xff]  ;;  %v2750_v50 = vld [vmem:[%s2552_s17 + $0x180] sm:$0xff]  ;;  %v2755_v51 = vld [vmem:[%s2552_s17 + $0x198] sm:$0xff] }
  0x32   : > { %412 = vperm.xlu1 %2300, %v2587_v9   ;;  %407 = vperm.xlu0 %2299, %v2590_v10   ;;  %4411 = vst [vmem:[#allocation8_spill] sm:$0xff] %v2755_v51  ;;  %v2758_v52 = vld [vmem:[%s2552_s17 + $0x190] sm:$0xff]  ;;  %v2763_v53 = vld [vmem:[%s2552_s17 + $0x1a8] sm:$0xff]  ;;  %v2766_v54 = vld [vmem:[%s2552_s17 + $0x1a0] sm:$0xff] }
  0x33   : > { %4412 = vst [vmem:[#allocation9_spill] sm:$0xff] %v2763_v53  ;;  %v2771_v55 = vld [vmem:[%s2552_s17 + $0x1b8] sm:$0xff]  ;;  %v2774_v56 = vld [vmem:[%s2552_s17 + $0x1b0] sm:$0xff]  ;;  %v2779_v57 = vld [vmem:[%s2552_s17 + $0x1c8] sm:$0xff] }
  0x34   : > { %4413 = vst [vmem:[#allocation10_spill] sm:$0xff] %v2771_v55  ;;  %4414 = vst [vmem:[#allocation11_spill] sm:$0xff] %v2774_v56  ;;  %v2782_v58 = vld [vmem:[%s2552_s17 + $0x1c0] sm:$0xff]  ;;  %v2787_v59 = vld [vmem:[%s2552_s17 + $0x1d8] sm:$0xff] }
  0x35   : > { %4415 = vst [vmem:[#allocation12_spill] sm:$0xff] %v2779_v57  ;;  %4416 = vst [vmem:[#allocation13_spill] sm:$0xff] %v2782_v58  ;;  %v2790_v60 = vld [vmem:[%s2552_s17 + $0x1d0] sm:$0xff]  ;;  %v2795_v61 = vld [vmem:[%s2552_s17 + $0x1e8] sm:$0xff] }
  0x36   : > { %422 = vperm.xlu1 %2300, %v2595_v11   ;;  %417 = vperm.xlu0 %2299, %v2598_v12   ;;  %4417 = vst [vmem:[#allocation14_spill] sm:$0xff] %v2787_v59  ;;  %4418 = vst [vmem:[#allocation15_spill] sm:$0xff] %v2790_v60  ;;  %v2798_v62 = vld [vmem:[%s2552_s17 + $0x1e0] sm:$0xff]  ;;  %v2803_v63 = vld [vmem:[%s2552_s17 + $0x1f8] sm:$0xff] }
  0x37   : > { %4419 = vst [vmem:[#allocation16_spill] sm:$0xff] %v2795_v61  ;;  %4420 = vst [vmem:[#allocation17_spill] sm:$0xff] %v2798_v62  ;;  %v2806_v0 = vld [vmem:[%s2552_s17 + $0x1f0] sm:$0xff]  ;;  %s3927_s17 = scalar_lea.vmem [#allocation4], %s3251_s13 }
  0x38   : > { %4421 = vst [vmem:[#allocation18_spill] sm:$0xff] %v2803_v63 }
  0x3a   : > { %432 = vperm.xlu1 %2300, %v2603_v13   ;;  %427 = vperm.xlu0 %2299, %v2606_v14  }
  0x3e   : > { %442 = vperm.xlu1 %2300, %v2611_v15   ;;  %437 = vperm.xlu0 %2299, %v2614_v16  }
  0x42   : > { %452 = vperm.xlu1 %2300, %v2619_v17   ;;  %447 = vperm.xlu0 %2299, %v2622_v18  }
  0x46   : > { %462 = vperm.xlu1 %2300, %v2627_v19   ;;  %457 = vperm.xlu0 %2299, %v2630_v20  }
  0x4a   : > { %472 = vperm.xlu1 %2300, %v2635_v21   ;;  %467 = vperm.xlu0 %2299, %v2638_v22  }
  0x4e   : > { %482 = vperm.xlu1 %2300, %v2643_v23   ;;  %477 = vperm.xlu0 %2299, %v2646_v24  }
  0x52   : > { %492 = vperm.xlu1 %2300, %v2651_v25   ;;  %487 = vperm.xlu0 %2299, %v2654_v26  }
  0x56   : > { %502 = vperm.xlu1 %2300, %v2659_v27   ;;  %497 = vperm.xlu0 %2299, %v2662_v28  }
  0x5a   : > { %512 = vperm.xlu1 %2300, %v2667_v29   ;;  %507 = vperm.xlu0 %2299, %v2670_v30  }
  0x5e   : > { %522 = vperm.xlu1 %2300, %v2675_v31   ;;  %517 = vperm.xlu0 %2299, %v2678_v32  }
  0x62   : > { %532 = vperm.xlu1 %2300, %v2683_v33   ;;  %527 = vperm.xlu0 %2299, %v2686_v34  }
  0x66   : > { %542 = vperm.xlu1 %2300, %v2691_v35   ;;  %537 = vperm.xlu0 %2299, %v2694_v36  }
  0x6a   : > { %552 = vperm.xlu1 %2300, %v2699_v37   ;;  %547 = vperm.xlu0 %2299, %v2702_v38  }
  0x6e   : > { %562 = vperm.xlu1 %2300, %v2707_v39   ;;  %557 = vperm.xlu0 %2299, %v2710_v40  }
  0x72   : > { %572 = vperm.xlu1 %2300, %v2715_v41   ;;  %567 = vperm.xlu0 %2299, %v2718_v42  }
  0x76   : > { %582 = vperm.xlu1 %2300, %v2723_v43   ;;  %577 = vperm.xlu0 %2299, %v2726_v44  }
  0x7a   : > { %592 = vperm.xlu1 %2300, %v2731_v45   ;;  %587 = vperm.xlu0 %2299, %v2734_v46  }
  0x7e   : > { %602 = vperm.xlu1 %2300, %v2739_v47   ;;  %597 = vperm.xlu0 %2299, %v2742_v48  }
  0x82   : > { %612 = vperm.xlu1 %2300, %v2747_v49   ;;  %607 = vperm.xlu0 %2299, %v2750_v50  }
  0x86   : > { %622 = vperm.xlu1 %2300, %v2755_v51   ;;  %617 = vperm.xlu0 %2299, %v2758_v52  }
  0x8a   : > { %632 = vperm.xlu1 %2300, %v2763_v53   ;;  %627 = vperm.xlu0 %2299, %v2766_v54  }
  0x8e   : > { %642 = vperm.xlu1 %2300, %v2771_v55   ;;  %637 = vperm.xlu0 %2299, %v2774_v56  }
  0x92   : > { %652 = vperm.xlu1 %2300, %v2779_v57   ;;  %647 = vperm.xlu0 %2299, %v2782_v58  }
  0x96   : > { %662 = vperm.xlu1 %2300, %v2787_v59   ;;  %657 = vperm.xlu0 %2299, %v2790_v60   ;;  %v2434_v60 = vmov 1  }
  0x9a   : > { %672 = vperm.xlu1 %2300, %v2795_v61   ;;  %667 = vperm.xlu0 %2299, %v2798_v62  }
  0x9e   : > { %682 = vperm.xlu1 %2300, %v2803_v63   ;;  %677 = vperm.xlu0 %2299, %v2806_v0  }
  0xa1   : > { %v2810_v57 = vpop.permute.xlu1 %377  ;;  %v2812_v59 = vpop.permute.xlu0 %367 }
  0xa2   : > { %4422 = vst [vmem:[#allocation19_spill] sm:$0xff] %v2810_v57  ;;  %4423 = vst [vmem:[#allocation20_spill] sm:$0xff] %v2812_v59  ;;  %2302 = vset.pattern.permute.xlu1 %v2434_v60  ;;  %2301 = vset.pattern.permute.xlu0 %v2434_v60 }
  0xa3   : > { %758 = vperm.xlu1 %2302, %v2566_v4   ;;  %754 = vperm.xlu0 %2301, %v2558_v2  }
  0xa5   : > { %v2816_v61 = vpop.permute.xlu1 %382  ;;  %v2818_v62 = vpop.permute.xlu0 %372 }
  0xa6   : > { %4424 = vst [vmem:[#allocation21_spill] sm:$0xff] %v2816_v61  ;;  %4425 = vst [vmem:[#allocation22_spill] sm:$0xff] %v2818_v62 }
  0xa7   : > { %762 = vperm.xlu1 %2302, %v2555_v1   ;;  %766 = vperm.xlu0 %2301, %v2563_v3  }
  0xa9   : > { %v2822_v63 = vpop.permute.xlu1 %392  ;;  %v2824_v57 = vpop.permute.xlu0 %387 }
  0xaa   : > { %4426 = vst [vmem:[#allocation23_spill] sm:$0xff] %v2822_v63  ;;  %4427 = vst [vmem:[#allocation24_spill] sm:$0xff] %v2824_v57 }
  0xab   : > { %770 = vperm.xlu1 %2302, %v2574_v6   ;;  %774 = vperm.xlu0 %2301, %v2571_v5  }
  0xad   : > { %v2828_v60 = vpop.permute.xlu1 %402  ;;  %v2830_v59 = vpop.permute.xlu0 %397 }
  0xae   : > { %4428 = vst [vmem:[#allocation25_spill] sm:$0xff] %v2828_v60  ;;  %4429 = vst [vmem:[#allocation26_spill] sm:$0xff] %v2830_v59 }
  0xaf   : > { %778 = vperm.xlu1 %2302, %v2582_v8   ;;  %782 = vperm.xlu0 %2301, %v2579_v7  }
  0xb1   : > { %v2834_v61 = vpop.permute.xlu1 %412  ;;  %v2836_v62 = vpop.permute.xlu0 %407 }
  0xb2   : > { %4430 = vst [vmem:[#allocation27_spill] sm:$0xff] %v2834_v61  ;;  %4431 = vst [vmem:[#allocation28_spill] sm:$0xff] %v2836_v62 }
  0xb3   : > { %786 = vperm.xlu1 %2302, %v2590_v10   ;;  %790 = vperm.xlu0 %2301, %v2587_v9  }
  0xb5   : > { %v2840_v63 = vpop.permute.xlu1 %422  ;;  %v2842_v57 = vpop.permute.xlu0 %417 }
  0xb6   : > { %4432 = vst [vmem:[#allocation29_spill] sm:$0xff] %v2840_v63  ;;  %4433 = vst [vmem:[#allocation30_spill] sm:$0xff] %v2842_v57 }
  0xb7   : > { %794 = vperm.xlu1 %2302, %v2598_v12   ;;  %798 = vperm.xlu0 %2301, %v2595_v11  }
  0xb9   : > { %v2846_v60 = vpop.permute.xlu1 %432  ;;  %v2848_v59 = vpop.permute.xlu0 %427 }
  0xba   : > { %4434 = vst [vmem:[#allocation31_spill] sm:$0xff] %v2846_v60  ;;  %4435 = vst [vmem:[#allocation32_spill] sm:$0xff] %v2848_v59 }
  0xbb   : > { %802 = vperm.xlu1 %2302, %v2606_v14   ;;  %806 = vperm.xlu0 %2301, %v2603_v13  }
  0xbd   : > { %v2852_v61 = vpop.permute.xlu1 %442  ;;  %v2854_v62 = vpop.permute.xlu0 %437 }
  0xbe   : > { %4436 = vst [vmem:[#allocation33_spill] sm:$0xff] %v2852_v61  ;;  %4437 = vst [vmem:[#allocation34_spill] sm:$0xff] %v2854_v62 }
  0xbf   : > { %810 = vperm.xlu1 %2302, %v2614_v16   ;;  %814 = vperm.xlu0 %2301, %v2611_v15  }
  0xc1   : > { %v2858_v63 = vpop.permute.xlu1 %452  ;;  %v2860_v57 = vpop.permute.xlu0 %447 }
  0xc2   : > { %4438 = vst [vmem:[#allocation35_spill] sm:$0xff] %v2858_v63  ;;  %4439 = vst [vmem:[#allocation36_spill] sm:$0xff] %v2860_v57 }
  0xc3   : > { %818 = vperm.xlu1 %2302, %v2622_v18   ;;  %822 = vperm.xlu0 %2301, %v2619_v17  }
  0xc5   : > { %v2864_v60 = vpop.permute.xlu1 %462  ;;  %v2866_v59 = vpop.permute.xlu0 %457 }
  0xc6   : > { %4440 = vst [vmem:[#allocation37_spill] sm:$0xff] %v2864_v60  ;;  %4441 = vst [vmem:[#allocation38_spill] sm:$0xff] %v2866_v59 }
  0xc7   : > { %826 = vperm.xlu1 %2302, %v2630_v20   ;;  %830 = vperm.xlu0 %2301, %v2627_v19  }
  0xc9   : > { %v2870_v61 = vpop.permute.xlu1 %472  ;;  %v2872_v62 = vpop.permute.xlu0 %467 }
  0xca   : > { %4442 = vst [vmem:[#allocation39_spill] sm:$0xff] %v2870_v61  ;;  %4443 = vst [vmem:[#allocation40_spill] sm:$0xff] %v2872_v62 }
  0xcb   : > { %834 = vperm.xlu1 %2302, %v2638_v22   ;;  %838 = vperm.xlu0 %2301, %v2635_v21  }
  0xcd   : > { %v2876_v63 = vpop.permute.xlu1 %482  ;;  %v2878_v57 = vpop.permute.xlu0 %477 }
  0xce   : > { %4444 = vst [vmem:[#allocation41_spill] sm:$0xff] %v2876_v63  ;;  %4445 = vst [vmem:[#allocation42_spill] sm:$0xff] %v2878_v57 }
  0xcf   : > { %842 = vperm.xlu1 %2302, %v2646_v24   ;;  %846 = vperm.xlu0 %2301, %v2643_v23  }
  0xd1   : > { %v2882_v60 = vpop.permute.xlu1 %492  ;;  %v2884_v59 = vpop.permute.xlu0 %487 }
  0xd2   : > { %4446 = vst [vmem:[#allocation43_spill] sm:$0xff] %v2882_v60  ;;  %4447 = vst [vmem:[#allocation44_spill] sm:$0xff] %v2884_v59 }
  0xd3   : > { %850 = vperm.xlu1 %2302, %v2654_v26   ;;  %854 = vperm.xlu0 %2301, %v2651_v25  }
  0xd5   : > { %v2888_v61 = vpop.permute.xlu1 %502  ;;  %v2890_v62 = vpop.permute.xlu0 %497 }
  0xd6   : > { %4448 = vst [vmem:[#allocation45_spill] sm:$0xff] %v2888_v61  ;;  %4449 = vst [vmem:[#allocation46_spill] sm:$0xff] %v2890_v62 }
  0xd7   : > { %858 = vperm.xlu1 %2302, %v2662_v28   ;;  %862 = vperm.xlu0 %2301, %v2659_v27  }
  0xd9   : > { %v2894_v63 = vpop.permute.xlu1 %512  ;;  %v2896_v57 = vpop.permute.xlu0 %507 }
  0xda   : > { %4450 = vst [vmem:[#allocation47_spill] sm:$0xff] %v2894_v63  ;;  %4451 = vst [vmem:[#allocation48_spill] sm:$0xff] %v2896_v57 }
  0xdb   : > { %866 = vperm.xlu1 %2302, %v2670_v30   ;;  %870 = vperm.xlu0 %2301, %v2667_v29  }
  0xdd   : > { %v2900_v60 = vpop.permute.xlu1 %522  ;;  %v2902_v59 = vpop.permute.xlu0 %517 }
  0xde   : > { %4452 = vst [vmem:[#allocation49_spill] sm:$0xff] %v2900_v60  ;;  %4453 = vst [vmem:[#allocation50_spill] sm:$0xff] %v2902_v59 }
  0xdf   : > { %874 = vperm.xlu1 %2302, %v2678_v32   ;;  %878 = vperm.xlu0 %2301, %v2675_v31  }
  0xe1   : > { %v2906_v61 = vpop.permute.xlu1 %532  ;;  %v2908_v62 = vpop.permute.xlu0 %527 }
  0xe2   : > { %4454 = vst [vmem:[#allocation51_spill] sm:$0xff] %v2906_v61  ;;  %4455 = vst [vmem:[#allocation52_spill] sm:$0xff] %v2908_v62 }
  0xe3   : > { %882 = vperm.xlu1 %2302, %v2686_v34   ;;  %886 = vperm.xlu0 %2301, %v2683_v33  }
  0xe5   : > { %v2912_v63 = vpop.permute.xlu1 %542  ;;  %v2914_v57 = vpop.permute.xlu0 %537 }
  0xe6   : > { %4456 = vst [vmem:[#allocation53_spill] sm:$0xff] %v2912_v63  ;;  %4457 = vst [vmem:[#allocation54_spill] sm:$0xff] %v2914_v57 }
  0xe7   : > { %890 = vperm.xlu1 %2302, %v2694_v36   ;;  %894 = vperm.xlu0 %2301, %v2691_v35  }
  0xe9   : > { %v2918_v60 = vpop.permute.xlu1 %552  ;;  %v2920_v59 = vpop.permute.xlu0 %547 }
  0xea   : > { %4458 = vst [vmem:[#allocation55_spill] sm:$0xff] %v2918_v60  ;;  %4459 = vst [vmem:[#allocation56_spill] sm:$0xff] %v2920_v59 }
  0xeb   : > { %898 = vperm.xlu1 %2302, %v2702_v38   ;;  %902 = vperm.xlu0 %2301, %v2699_v37  }
  0xed   : > { %v2924_v61 = vpop.permute.xlu1 %562  ;;  %v2926_v62 = vpop.permute.xlu0 %557 }
  0xee   : > { %4460 = vst [vmem:[#allocation57_spill] sm:$0xff] %v2924_v61  ;;  %4461 = vst [vmem:[#allocation58_spill] sm:$0xff] %v2926_v62 }
  0xef   : > { %906 = vperm.xlu1 %2302, %v2710_v40   ;;  %910 = vperm.xlu0 %2301, %v2707_v39  }
  0xf1   : > { %v2930_v63 = vpop.permute.xlu1 %572  ;;  %v2932_v57 = vpop.permute.xlu0 %567 }
  0xf2   : > { %4462 = vst [vmem:[#allocation59_spill] sm:$0xff] %v2930_v63  ;;  %4463 = vst [vmem:[#allocation60_spill] sm:$0xff] %v2932_v57 }
  0xf3   : > { %914 = vperm.xlu1 %2302, %v2718_v42   ;;  %918 = vperm.xlu0 %2301, %v2715_v41  }
  0xf5   : > { %v2936_v60 = vpop.permute.xlu1 %582  ;;  %v2938_v59 = vpop.permute.xlu0 %577 }
  0xf6   : > { %4464 = vst [vmem:[#allocation61_spill] sm:$0xff] %v2936_v60  ;;  %4465 = vst [vmem:[#allocation62_spill] sm:$0xff] %v2938_v59 }
  0xf7   : > { %922 = vperm.xlu1 %2302, %v2726_v44   ;;  %926 = vperm.xlu0 %2301, %v2723_v43  }
  0xf9   : > { %v2942_v61 = vpop.permute.xlu1 %592  ;;  %v2944_v62 = vpop.permute.xlu0 %587 }
  0xfa   : > { %4466 = vst [vmem:[#allocation63_spill] sm:$0xff] %v2942_v61  ;;  %4467 = vst [vmem:[#allocation64_spill] sm:$0xff] %v2944_v62 }
  0xfb   : > { %930 = vperm.xlu1 %2302, %v2734_v46   ;;  %934 = vperm.xlu0 %2301, %v2731_v45  }
  0xfd   : > { %v2948_v63 = vpop.permute.xlu1 %602  ;;  %v2950_v57 = vpop.permute.xlu0 %597 }
  0xfe   : > { %4468 = vst [vmem:[#allocation65_spill] sm:$0xff] %v2948_v63  ;;  %4469 = vst [vmem:[#allocation66_spill] sm:$0xff] %v2950_v57 }
  0xff   : > { %938 = vperm.xlu1 %2302, %v2742_v48   ;;  %942 = vperm.xlu0 %2301, %v2739_v47  }
 0x101   : > { %v2954_v60 = vpop.permute.xlu1 %612  ;;  %v2956_v59 = vpop.permute.xlu0 %607 }
 0x102   : > { %4470 = vst [vmem:[#allocation67_spill] sm:$0xff] %v2954_v60  ;;  %4471 = vst [vmem:[#allocation68_spill] sm:$0xff] %v2956_v59 }
 0x103   : > { %946 = vperm.xlu1 %2302, %v2750_v50   ;;  %950 = vperm.xlu0 %2301, %v2747_v49  }
 0x105   : > { %v2960_v61 = vpop.permute.xlu1 %622  ;;  %v2962_v62 = vpop.permute.xlu0 %617 }
 0x106   : > { %4472 = vst [vmem:[#allocation69_spill] sm:$0xff] %v2960_v61  ;;  %4473 = vst [vmem:[#allocation70_spill] sm:$0xff] %v2962_v62 }
 0x107   : > { %954 = vperm.xlu1 %2302, %v2758_v52   ;;  %958 = vperm.xlu0 %2301, %v2755_v51  }
 0x109   : > { %v2966_v63 = vpop.permute.xlu1 %632  ;;  %v2968_v57 = vpop.permute.xlu0 %627 }
 0x10a   : > { %4474 = vst [vmem:[#allocation71_spill] sm:$0xff] %v2966_v63  ;;  %4475 = vst [vmem:[#allocation72_spill] sm:$0xff] %v2968_v57  ;;  %v4480_v63 = vld [vmem:[#allocation12_spill] sm:$0xff] }
 0x10b   : > { %962 = vperm.xlu1 %2302, %v2766_v54   ;;  %966 = vperm.xlu0 %2301, %v2763_v53   ;;  %v4483_v53 = vld [vmem:[#allocation15_spill] sm:$0xff] }
 0x10d   : > { %v2972_v60 = vpop.permute.xlu1 %642  ;;  %v2974_v59 = vpop.permute.xlu0 %637 }
 0x10e   : > { %4476 = vst [vmem:[#allocation73_spill] sm:$0xff] %v2972_v60  ;;  %4477 = vst [vmem:[#allocation74_spill] sm:$0xff] %v2974_v59  ;;  %v4484_v60 = vld [vmem:[#allocation14_spill] sm:$0xff] }
 0x10f   : > { %970 = vperm.xlu1 %2302, %v2774_v56   ;;  %974 = vperm.xlu0 %2301, %v2771_v55   ;;  %v4487_v55 = vld [vmem:[#allocation17_spill] sm:$0xff] }
 0x111   : > { %v2978_v61 = vpop.permute.xlu1 %652  ;;  %v2980_v62 = vpop.permute.xlu0 %647 }
 0x112   : > { %4478 = vst [vmem:[#allocation75_spill] sm:$0xff] %v2978_v61  ;;  %4479 = vst [vmem:[#allocation76_spill] sm:$0xff] %v2980_v62  ;;  %v4488_v61 = vld [vmem:[#allocation16_spill] sm:$0xff] }
 0x113   : > { %978 = vperm.xlu1 %2302, %v2782_v58   ;;  %982 = vperm.xlu0 %2301, %v4480_v63  }
 0x115   : > { %v2984_v57 = vpop.permute.xlu1 %662  ;;  %v2986_v51 = vpop.permute.xlu0 %657 }
 0x116   : > { %4481 = vst [vmem:[#allocation77_spill] sm:$0xff] %v2984_v57  ;;  %4482 = vst [vmem:[#allocation78_spill] sm:$0xff] %v2986_v51  ;;  %v4491_v57 = vld [vmem:[#allocation18_spill] sm:$0xff] }
 0x117   : > { %986 = vperm.xlu1 %2302, %v4483_v53   ;;  %990 = vperm.xlu0 %2301, %v4484_v60   ;;  %v2435_v60 = vmov 2  }
 0x119   : > { %v2990_v59 = vpop.permute.xlu1 %672  ;;  %v2992_v56 = vpop.permute.xlu0 %667 }
 0x11a   : > { %4485 = vst [vmem:[#allocation15_spill] sm:$0xff] %v2990_v59  ;;  %4486 = vst [vmem:[#allocation79_spill] sm:$0xff] %v2992_v56 }
 0x11b   : > { %994 = vperm.xlu1 %2302, %v4487_v55   ;;  %998 = vperm.xlu0 %2301, %v4488_v61  }
 0x11d   : > { %v2996_v62 = vpop.permute.xlu1 %682  ;;  %v2998_v58 = vpop.permute.xlu0 %677 }
 0x11e   : > { %4489 = vst [vmem:[#allocation17_spill] sm:$0xff] %v2996_v62  ;;  %4490 = vst [vmem:[#allocation16_spill] sm:$0xff] %v2998_v58 }
 0x11f   : > { %1002 = vperm.xlu1 %2302, %v2806_v0   ;;  %1006 = vperm.xlu0 %2301, %v4491_v57  }
 0x122   : > { %v3002_v51 = vpop.permute.xlu1 %758  ;;  %v3004_v63 = vpop.permute.xlu0 %754 }
 0x123   : > { %2303 = vset.pattern.permute.xlu1 %v2435_v60  ;;  %2304 = vset.pattern.permute.xlu0 %v2435_v60 }
 0x124   : > { %1142 = vperm.xlu1 %2303, %v2558_v2   ;;  %1146 = vperm.xlu0 %2304, %v2566_v4  }
 0x126   : > { %v3008_v59 = vpop.permute.xlu1 %762  ;;  %v3010_v62 = vpop.permute.xlu0 %766 }
 0x128   : > { %1150 = vperm.xlu1 %2303, %v2555_v1   ;;  %1158 = vperm.xlu0 %2304, %v2574_v6  }
 0x12a   : > { %v3014_v58 = vpop.permute.xlu1 %770  ;;  %v3016_v56 = vpop.permute.xlu0 %774 }
 0x12c   : > { %1154 = vperm.xlu1 %2303, %v2563_v3   ;;  %1166 = vperm.xlu0 %2304, %v2582_v8  }
 0x12e   : > { %v3020_v60 = vpop.permute.xlu1 %778  ;;  %v3022_v2 = vpop.permute.xlu0 %782 }
 0x130   : > { %1162 = vperm.xlu1 %2303, %v2571_v5   ;;  %1174 = vperm.xlu0 %2304, %v2590_v10  }
 0x132   : > { %v3026_v4 = vpop.permute.xlu1 %786  ;;  %v3028_v1 = vpop.permute.xlu0 %790 }
 0x134   : > { %1170 = vperm.xlu1 %2303, %v2579_v7   ;;  %1182 = vperm.xlu0 %2304, %v2598_v12  }
 0x136   : > { %v3032_v6 = vpop.permute.xlu1 %794  ;;  %v3034_v3 = vpop.permute.xlu0 %798 }
 0x138   : > { %1178 = vperm.xlu1 %2303, %v2587_v9   ;;  %1190 = vperm.xlu0 %2304, %v2606_v14  }
 0x13a   : > { %v3038_v8 = vpop.permute.xlu1 %802  ;;  %v3040_v5 = vpop.permute.xlu0 %806 }
 0x13c   : > { %1186 = vperm.xlu1 %2303, %v2595_v11   ;;  %1198 = vperm.xlu0 %2304, %v2614_v16  }
 0x13e   : > { %v3044_v10 = vpop.permute.xlu1 %810  ;;  %v3046_v7 = vpop.permute.xlu0 %814 }
 0x140   : > { %1194 = vperm.xlu1 %2303, %v2603_v13   ;;  %1206 = vperm.xlu0 %2304, %v2622_v18  }
 0x142   : > { %v3050_v12 = vpop.permute.xlu1 %818  ;;  %v3052_v9 = vpop.permute.xlu0 %822 }
 0x144   : > { %1202 = vperm.xlu1 %2303, %v2611_v15   ;;  %1214 = vperm.xlu0 %2304, %v2630_v20  }
 0x146   : > { %v3056_v14 = vpop.permute.xlu1 %826  ;;  %v3058_v11 = vpop.permute.xlu0 %830 }
 0x148   : > { %1210 = vperm.xlu1 %2303, %v2619_v17   ;;  %1222 = vperm.xlu0 %2304, %v2638_v22  }
 0x14a   : > { %v3062_v16 = vpop.permute.xlu1 %834  ;;  %v3064_v13 = vpop.permute.xlu0 %838 }
 0x14c   : > { %1218 = vperm.xlu1 %2303, %v2627_v19   ;;  %1230 = vperm.xlu0 %2304, %v2646_v24  }
 0x14e   : > { %v3068_v18 = vpop.permute.xlu1 %842  ;;  %v3070_v15 = vpop.permute.xlu0 %846 }
 0x150   : > { %1226 = vperm.xlu1 %2303, %v2635_v21   ;;  %1238 = vperm.xlu0 %2304, %v2654_v26  }
 0x152   : > { %v3074_v20 = vpop.permute.xlu1 %850  ;;  %v3076_v17 = vpop.permute.xlu0 %854 }
 0x154   : > { %1234 = vperm.xlu1 %2303, %v2643_v23   ;;  %1246 = vperm.xlu0 %2304, %v2662_v28  }
 0x156   : > { %v3080_v22 = vpop.permute.xlu1 %858  ;;  %v3082_v19 = vpop.permute.xlu0 %862 }
 0x158   : > { %1242 = vperm.xlu1 %2303, %v2651_v25   ;;  %1254 = vperm.xlu0 %2304, %v2670_v30  }
 0x15a   : > { %v3086_v24 = vpop.permute.xlu1 %866  ;;  %v3088_v21 = vpop.permute.xlu0 %870 }
 0x15c   : > { %1250 = vperm.xlu1 %2303, %v2659_v27   ;;  %1262 = vperm.xlu0 %2304, %v2678_v32  }
 0x15e   : > { %v3092_v26 = vpop.permute.xlu1 %874  ;;  %v3094_v23 = vpop.permute.xlu0 %878 }
 0x160   : > { %1258 = vperm.xlu1 %2303, %v2667_v29   ;;  %1270 = vperm.xlu0 %2304, %v2686_v34  }
 0x162   : > { %v3098_v28 = vpop.permute.xlu1 %882  ;;  %v3100_v25 = vpop.permute.xlu0 %886 }
 0x164   : > { %1266 = vperm.xlu1 %2303, %v2675_v31   ;;  %1278 = vperm.xlu0 %2304, %v2694_v36  }
 0x166   : > { %v3104_v30 = vpop.permute.xlu1 %890  ;;  %v3106_v27 = vpop.permute.xlu0 %894 }
 0x168   : > { %1274 = vperm.xlu1 %2303, %v2683_v33   ;;  %1286 = vperm.xlu0 %2304, %v2702_v38  }
 0x16a   : > { %v3110_v32 = vpop.permute.xlu1 %898  ;;  %v3112_v29 = vpop.permute.xlu0 %902 }
 0x16c   : > { %1282 = vperm.xlu1 %2303, %v2691_v35   ;;  %1294 = vperm.xlu0 %2304, %v2710_v40  }
 0x16e   : > { %v3116_v34 = vpop.permute.xlu1 %906  ;;  %v3118_v31 = vpop.permute.xlu0 %910 }
 0x170   : > { %1290 = vperm.xlu1 %2303, %v2699_v37   ;;  %1302 = vperm.xlu0 %2304, %v2718_v42  }
 0x172   : > { %v3122_v36 = vpop.permute.xlu1 %914  ;;  %v3124_v33 = vpop.permute.xlu0 %918 }
 0x174   : > { %1298 = vperm.xlu1 %2303, %v2707_v39   ;;  %1310 = vperm.xlu0 %2304, %v2726_v44  }
 0x176   : > { %v3128_v38 = vpop.permute.xlu1 %922  ;;  %v3130_v35 = vpop.permute.xlu0 %926 }
 0x178   : > { %1306 = vperm.xlu1 %2303, %v2715_v41   ;;  %1318 = vperm.xlu0 %2304, %v2734_v46  }
 0x17a   : > { %v3134_v40 = vpop.permute.xlu1 %930  ;;  %v3136_v37 = vpop.permute.xlu0 %934 }
 0x17b   : > { %4492 = vst [vmem:[#allocation18_spill] sm:$0xff] %v3136_v37 }
 0x17c   : > { %1314 = vperm.xlu1 %2303, %v2723_v43   ;;  %1326 = vperm.xlu0 %2304, %v2742_v48  }
 0x17e   : > { %v3140_v42 = vpop.permute.xlu1 %938  ;;  %v3142_v39 = vpop.permute.xlu0 %942 }
 0x17f   : > { %4493 = vst [vmem:[#allocation80_spill] sm:$0xff] %v3142_v39  ;;  %v685_v39 = vlaneseq }
 0x180   : > { %1322 = vperm.xlu1 %2303, %v2731_v45   ;;  %1334 = vperm.xlu0 %2304, %v2750_v50   ;;  %v4500_v50 = vld [vmem:[#allocation8_spill] sm:$0xff] }
 0x182   : > { %v3146_v44 = vpop.permute.xlu1 %946  ;;  %v3148_v41 = vpop.permute.xlu0 %950 }
 0x183   : > { %4494 = vst [vmem:[#allocation81_spill] sm:$0xff] %v3146_v44  ;;  %4495 = vst [vmem:[#allocation82_spill] sm:$0xff] %v3148_v41  ;;  %v4501_v41 = vld [vmem:[#allocation11_spill] sm:$0xff] }
 0x184   : > { %1330 = vperm.xlu1 %2303, %v2739_v47   ;;  %1342 = vperm.xlu0 %2304, %v2758_v52  }
 0x186   : > { %v3152_v46 = vpop.permute.xlu1 %954  ;;  %v3154_v43 = vpop.permute.xlu0 %958 }
 0x187   : > { %4496 = vst [vmem:[#allocation83_spill] sm:$0xff] %v3152_v46  ;;  %4497 = vst [vmem:[#allocation84_spill] sm:$0xff] %v3154_v43  ;;  %v4504_v46 = vld [vmem:[#allocation9_spill] sm:$0xff] }
 0x188   : > { %1338 = vperm.xlu1 %2303, %v2747_v49   ;;  %1350 = vperm.xlu0 %2304, %v2766_v54   ;;  %v4505_v43 = vld [vmem:[#allocation13_spill] sm:$0xff] }
 0x18a   : > { %v3158_v45 = vpop.permute.xlu1 %962  ;;  %v3160_v48 = vpop.permute.xlu0 %966 }
 0x18b   : > { %4498 = vst [vmem:[#allocation85_spill] sm:$0xff] %v3158_v45  ;;  %4499 = vst [vmem:[#allocation86_spill] sm:$0xff] %v3160_v48  ;;  %v4508_v45 = vld [vmem:[#allocation10_spill] sm:$0xff] }
 0x18c   : > { %1346 = vperm.xlu1 %2303, %v4500_v50   ;;  %1358 = vperm.xlu0 %2304, %v4501_v41   ;;  %v686_v50 = vshrl.u32 %v685_v39, 7 }
 0x18e   : > { %v3164_v47 = vpop.permute.xlu1 %970  ;;  %v3166_v52 = vpop.permute.xlu0 %974 }
 0x18f   : > { %4502 = vst [vmem:[#allocation8_spill] sm:$0xff] %v3164_v47  ;;  %4503 = vst [vmem:[#allocation11_spill] sm:$0xff] %v3166_v52  ;;  %v687_v52 = vsub.s32 0, %v686_v50 }
 0x190   : > { %1354 = vperm.xlu1 %2303, %v4504_v46   ;;  %1366 = vperm.xlu0 %2304, %v4505_v43   ;;  %v1011_v46 = vsub.s32 1, %v686_v50  ;;  %v4511_v43 = vld [vmem:[#allocation12_spill] sm:$0xff] }
 0x192   : > { %v3170_v49 = vpop.permute.xlu1 %978  ;;  %v3172_v54 = vpop.permute.xlu0 %982 }
 0x193   : > { %4506 = vst [vmem:[#allocation9_spill] sm:$0xff] %v3170_v49  ;;  %4507 = vst [vmem:[#allocation13_spill] sm:$0xff] %v3172_v54 }
 0x194   : > { %1362 = vperm.xlu1 %2303, %v4508_v45   ;;  %1374 = vperm.xlu0 %2304, %v4483_v53   ;;  %v364_v53 = vld [vmem:[%s289_s8] sm:$0x7] }
 0x195   : > { %v3190_v39 = vrot.slane %v364_v53, %v1011_v46 }
 0x196   : > { %v3177_v41 = vpop.permute.xlu1 %986  ;;  %v3179_v48 = vpop.permute.xlu0 %990 }
 0x197   : > { %4509 = vst [vmem:[#allocation10_spill] sm:$0xff] %v3177_v41  ;;  %4510 = vst [vmem:[#allocation87_spill] sm:$0xff] %v3179_v48  ;;  %v4514_v41 = vld [vmem:[#allocation14_spill] sm:$0xff]  ;;  %v1399_v48 = vsub.s32 2, %v686_v50 }
 0x198   : > { %1370 = vperm.xlu1 %2303, %v4511_v43   ;;  %1382 = vperm.xlu0 %2304, %v4487_v55   ;;  %v3198_v43 = vrot.slane %v364_v53, %v687_v52  ;;  %v1014_v55 = vmul.f32 %v3190_v39, %v3002_v51  ;;  %v4518_v50 = vld [vmem:[#allocation22_spill] sm:$0xff]  ;;  %v1015_v52 = vmul.f32 %v3190_v39, %v3008_v59 }
 0x199   : > { %v3205_v46 = vrot.slane %v364_v53, %v1399_v48  ;;  %v1017_v51 = vmul.f32 %v3190_v39, %v3014_v58  ;;  %v4519_v53 = vld [vmem:[#allocation19_spill] sm:$0xff] }
 0x19a   : > { %v3186_v54 = vpop.permute.xlu1 %994  ;;  %v3188_v45 = vpop.permute.xlu0 %998  ;;  %v3225_v58 = vld [vmem:[%s4353_s2] ss:$0 sm:$0xff] }
 0x19b   : > { %4512 = vst [vmem:[#allocation12_spill] sm:$0xff] %v3186_v54  ;;  %4513 = vst [vmem:[#allocation88_spill] sm:$0xff] %v3188_v45  ;;  %v1013_v45 = vmul.f32 %v3190_v39, %v3004_v63 }
 0x19c   : > { %1378 = vperm.xlu1 %2303, %v4514_v41   ;;  %1390 = vperm.xlu0 %2304, %v2806_v0   ;;  %v4517_v41 = vld [vmem:[#allocation20_spill] sm:$0xff] }
 0x19d   : > { %v689_v0 = vmul.f32 %v3198_v43, %v4517_v41  ;;  %v691_v41 = vmul.f32 %v3198_v43, %v4519_v53 }
 0x19e   : > { %v3194_v49 = vpop.permute.xlu1 %1002  ;;  %v3196_v47 = vpop.permute.xlu0 %1006 }
 0x19f   : > { %4515 = vst [vmem:[#allocation14_spill] sm:$0xff] %v3194_v49  ;;  %4516 = vst [vmem:[#allocation89_spill] sm:$0xff] %v3196_v47  ;;  %v690_v49 = vmul.f32 %v3198_v43, %v4518_v50  ;;  %v1077_v44 = vadd.f32 %v1013_v45, %v689_v0  ;;  %v4520_v50 = vld [vmem:[#allocation24_spill] sm:$0xff]  ;;  %v1019_v45 = vmul.f32 %v3190_v39, %v3020_v60 }
 0x1a0   : > { %1386 = vperm.xlu1 %2303, %v4488_v61   ;;  %v693_v37 = vmul.f32 %v3198_v43, %v4520_v50  ;;  %v1018_v50 = vmul.f32 %v3190_v39, %v3016_v56  ;;  %v4525_v56 = vld [vmem:[#allocation28_spill] sm:$0xff] }
 0x1a1   : > { %v1078_v63 = vadd.f32 %v1014_v55, %v690_v49 }
 0x1a3   : > { %v1143_v47 = vpop.permute.xlu1 %1142  ;;  %v1147_v54 = vpop.permute.xlu0 %1146 }
 0x1a4   : > { %v1401_v61 = vmul.f32 %v3205_v46, %v1143_v47  ;;  %v1402_v48 = vmul.f32 %v3205_v46, %v1147_v54  ;;  %1394 = vperm.xlu1 %2303, %v4491_v57   ;;  %v1079_v57 = vadd.f32 %v1015_v52, %v691_v41  ;;  %v1016_v47 = vmul.f32 %v3190_v39, %v3010_v62  ;;  %v4522_v52 = vld [vmem:[#allocation21_spill] sm:$0xff]  ;;  %v4523_v62 = vld [vmem:[#allocation26_spill] sm:$0xff] }
 0x1a5   : > { %v1081_v54 = vadd.f32 %v1017_v51, %v693_v37  ;;  %v692_v53 = vmul.f32 %v3198_v43, %v4522_v52  ;;  %v695_v37 = vmul.f32 %v3198_v43, %v4523_v62 }
 0x1a6   : > { %v1465_v59 = vadd.f32 %v1401_v61, %v1077_v44  ;;  %v1466_v49 = vadd.f32 %v1402_v48, %v1078_v63 }
 0x1a7   : > { %v1151_v55 = vpop.permute.xlu1 %1150  ;;  %v1159_v0 = vpop.permute.xlu0 %1158  ;;  %v1080_v41 = vadd.f32 %v1016_v47, %v692_v53  ;;  %v4524_v47 = vld [vmem:[#allocation23_spill] sm:$0xff]  ;;  %v1020_v53 = vmul.f32 %v3190_v39, %v3022_v2  ;;  %v4527_v2 = vld [vmem:[#allocation30_spill] sm:$0xff] }
 0x1a8   : > { %v3239_v44 = vadd.f32 %v3225_v58, %v1465_v59  ;;  %v3242_v63 = vadd.f32 %v3225_v58, %v1466_v49  ;;  %v1403_v61 = vmul.f32 %v3205_v46, %v1151_v55  ;;  %v1405_v48 = vmul.f32 %v3205_v46, %v1159_v0 }
 0x1a9   : > { %v1083_v59 = vadd.f32 %v1019_v45, %v695_v37  ;;  %v1021_v49 = vmul.f32 %v3190_v39, %v3026_v4  ;;  %v697_v45 = vmul.f32 %v3198_v43, %v4525_v56 }
 0x1aa   : > { %4521 = vst [vmem:[#allocation20_spill] sm:$0xff] %v3242_v63  ;;  %1601 = vst.msk [vmem:[%s3232_s16] sm:$0xff] %vm1600_vm0, %v3239_v44  ;;  %v1467_v60 = vadd.f32 %v1403_v61, %v1079_v57  ;;  %v1469_v51 = vadd.f32 %v1405_v48, %v1081_v54  ;;  %v694_v54 = vmul.f32 %v3198_v43, %v4524_v47 }
 0x1ab   : > { %1602 = vst.msk [vmem:[%s3232_s16 + $0x8] sm:$0xff] %vm1600_vm0, %v3242_v63  ;;  %v1155_v55 = vpop.permute.xlu1 %1154  ;;  %v1167_v0 = vpop.permute.xlu0 %1166  ;;  %v1085_v37 = vadd.f32 %v1021_v49, %v697_v45 }
 0x1ac   : > { %v3264_v52 = vadd.f32 %v3225_v58, %v1467_v60  ;;  %v3267_v62 = vadd.f32 %v3225_v58, %v1469_v51  ;;  %v1404_v63 = vmul.f32 %v3205_v46, %v1155_v55  ;;  %v1407_v57 = vmul.f32 %v3205_v46, %v1167_v0 }
 0x1ad   : > { %v1082_v48 = vadd.f32 %v1018_v50, %v694_v54  ;;  %v1023_v60 = vmul.f32 %v3190_v39, %v3032_v6  ;;  %v1022_v54 = vmul.f32 %v3190_v39, %v3028_v1  ;;  %v4529_v1 = vld [vmem:[#allocation32_spill] sm:$0xff] }
 0x1ae   : > { %1603 = vst.msk [vmem:[%s3232_s16 + $0x10] sm:$0xff] %vm1600_vm0, %v3264_v52  ;;  %1605 = vst.msk [vmem:[%s3232_s16 + $0x20] sm:$0xff] %vm1600_vm0, %v3267_v62  ;;  %v1468_v4 = vadd.f32 %v1404_v63, %v1080_v41  ;;  %v1471_v61 = vadd.f32 %v1407_v57, %v1083_v59  ;;  %v4526_v41 = vld [vmem:[#allocation25_spill] sm:$0xff]  ;;  %v699_v59 = vmul.f32 %v3198_v43, %v4527_v2 }
 0x1af   : > { %v1163_v51 = vpop.permute.xlu1 %1162  ;;  %v1175_v55 = vpop.permute.xlu0 %1174  ;;  %v696_v50 = vmul.f32 %v3198_v43, %v4526_v41 }
 0x1b0   : > { %v3286_v0 = vadd.f32 %v3225_v58, %v1468_v4  ;;  %v3289_v47 = vadd.f32 %v3225_v58, %v1471_v61  ;;  %v1406_v56 = vmul.f32 %v3205_v46, %v1163_v51  ;;  %v1409_v63 = vmul.f32 %v3205_v46, %v1175_v55 }
 0x1b1   : > { %v1084_v57 = vadd.f32 %v1020_v53, %v696_v50  ;;  %v1087_v45 = vadd.f32 %v1023_v60, %v699_v59  ;;  %v1025_v4 = vmul.f32 %v3190_v39, %v3038_v8  ;;  %v4528_v53 = vld [vmem:[#allocation27_spill] sm:$0xff]  ;;  %v701_v60 = vmul.f32 %v3198_v43, %v4529_v1 }
 0x1b2   : > { %1604 = vst.msk [vmem:[%s3232_s16 + $0x18] sm:$0xff] %vm1600_vm0, %v3286_v0  ;;  %1607 = vst.msk [vmem:[%s3232_s16 + $0x30] sm:$0xff] %vm1600_vm0, %v3289_v47  ;;  %v1470_v6 = vadd.f32 %v1406_v56, %v1082_v48  ;;  %v1473_v49 = vadd.f32 %v1409_v63, %v1085_v37  ;;  %v698_v37 = vmul.f32 %v3198_v43, %v4528_v53 }
 0x1b3   : > { %v1171_v61 = vpop.permute.xlu1 %1170  ;;  %v1183_v51 = vpop.permute.xlu0 %1182  ;;  %v1024_v50 = vmul.f32 %v3190_v39, %v3034_v3  ;;  %v1089_v59 = vadd.f32 %v1025_v4, %v701_v60  ;;  %v4531_v3 = vld [vmem:[#allocation34_spill] sm:$0xff] }
 0x1b4   : > { %v3308_v55 = vadd.f32 %v3225_v58, %v1470_v6  ;;  %v3311_v41 = vadd.f32 %v3225_v58, %v1473_v49  ;;  %v1408_v2 = vmul.f32 %v3205_v46, %v1171_v61  ;;  %v1411_v48 = vmul.f32 %v3205_v46, %v1183_v51 }
 0x1b5   : > { %v1086_v63 = vadd.f32 %v1022_v54, %v698_v37  ;;  %v1027_v6 = vmul.f32 %v3190_v39, %v3044_v10  ;;  %v4530_v54 = vld [vmem:[#allocation29_spill] sm:$0xff]  ;;  %v703_v4 = vmul.f32 %v3198_v43, %v4531_v3  ;;  %v1026_v37 = vmul.f32 %v3190_v39, %v3040_v5  ;;  %v4533_v5 = vld [vmem:[#allocation36_spill] sm:$0xff] }
 0x1b6   : > { %1606 = vst.msk [vmem:[%s3232_s16 + $0x28] sm:$0xff] %vm1600_vm0, %v3308_v55  ;;  %1609 = vst.msk [vmem:[%s3232_s16 + $0x40] sm:$0xff] %vm1600_vm0, %v3311_v41  ;;  %v1472_v8 = vadd.f32 %v1408_v2, %v1084_v57  ;;  %v1475_v56 = vadd.f32 %v1411_v48, %v1087_v45  ;;  %v700_v45 = vmul.f32 %v3198_v43, %v4530_v54 }
 0x1b7   : > { %v1179_v49 = vpop.permute.xlu1 %1178  ;;  %v1191_v61 = vpop.permute.xlu0 %1190  ;;  %v1091_v60 = vadd.f32 %v1027_v6, %v703_v4  ;;  %v705_v6 = vmul.f32 %v3198_v43, %v4533_v5 }
 0x1b8   : > { %v3330_v51 = vadd.f32 %v3225_v58, %v1472_v8  ;;  %v3333_v53 = vadd.f32 %v3225_v58, %v1475_v56  ;;  %v1410_v1 = vmul.f32 %v3205_v46, %v1179_v49  ;;  %v1413_v57 = vmul.f32 %v3205_v46, %v1191_v61 }
 0x1b9   : > { %v1088_v48 = vadd.f32 %v1024_v50, %v700_v45  ;;  %v1029_v8 = vmul.f32 %v3190_v39, %v3050_v12  ;;  %v4532_v50 = vld [vmem:[#allocation31_spill] sm:$0xff]  ;;  %v1028_v45 = vmul.f32 %v3190_v39, %v3046_v7  ;;  %v4535_v7 = vld [vmem:[#allocation38_spill] sm:$0xff] }
 0x1ba   : > { %1608 = vst.msk [vmem:[%s3232_s16 + $0x38] sm:$0xff] %vm1600_vm0, %v3330_v51  ;;  %1611 = vst.msk [vmem:[%s3232_s16 + $0x50] sm:$0xff] %vm1600_vm0, %v3333_v53  ;;  %v1474_v10 = vadd.f32 %v1410_v1, %v1086_v63  ;;  %v1477_v2 = vadd.f32 %v1413_v57, %v1089_v59  ;;  %v702_v59 = vmul.f32 %v3198_v43, %v4532_v50 }
 0x1bb   : > { %v1187_v56 = vpop.permute.xlu1 %1186  ;;  %v1199_v49 = vpop.permute.xlu0 %1198  ;;  %v1093_v4 = vadd.f32 %v1029_v8, %v705_v6  ;;  %v707_v8 = vmul.f32 %v3198_v43, %v4535_v7 }
 0x1bc   : > { %v3352_v61 = vadd.f32 %v3225_v58, %v1474_v10  ;;  %v3355_v54 = vadd.f32 %v3225_v58, %v1477_v2  ;;  %v1412_v3 = vmul.f32 %v3205_v46, %v1187_v56  ;;  %v1415_v63 = vmul.f32 %v3205_v46, %v1199_v49 }
 0x1bd   : > { %v1090_v57 = vadd.f32 %v1026_v37, %v702_v59  ;;  %v1031_v10 = vmul.f32 %v3190_v39, %v3056_v14  ;;  %v4534_v37 = vld [vmem:[#allocation33_spill] sm:$0xff]  ;;  %v1030_v59 = vmul.f32 %v3190_v39, %v3052_v9  ;;  %v4537_v9 = vld [vmem:[#allocation40_spill] sm:$0xff] }
 0x1be   : > { %1610 = vst.msk [vmem:[%s3232_s16 + $0x48] sm:$0xff] %vm1600_vm0, %v3352_v61  ;;  %1613 = vst.msk [vmem:[%s3232_s16 + $0x60] sm:$0xff] %vm1600_vm0, %v3355_v54  ;;  %v1476_v12 = vadd.f32 %v1412_v3, %v1088_v48  ;;  %v1479_v1 = vadd.f32 %v1415_v63, %v1091_v60  ;;  %v704_v60 = vmul.f32 %v3198_v43, %v4534_v37 }
 0x1bf   : > { %v1195_v2 = vpop.permute.xlu1 %1194  ;;  %v1207_v56 = vpop.permute.xlu0 %1206  ;;  %v1095_v6 = vadd.f32 %v1031_v10, %v707_v8  ;;  %v709_v10 = vmul.f32 %v3198_v43, %v4537_v9 }
 0x1c0   : > { %v3374_v49 = vadd.f32 %v3225_v58, %v1476_v12  ;;  %v3377_v50 = vadd.f32 %v3225_v58, %v1479_v1  ;;  %v1414_v5 = vmul.f32 %v3205_v46, %v1195_v2  ;;  %v1417_v48 = vmul.f32 %v3205_v46, %v1207_v56 }
 0x1c1   : > { %v1092_v63 = vadd.f32 %v1028_v45, %v704_v60  ;;  %v1033_v12 = vmul.f32 %v3190_v39, %v3062_v16  ;;  %v4536_v45 = vld [vmem:[#allocation35_spill] sm:$0xff]  ;;  %v1032_v60 = vmul.f32 %v3190_v39, %v3058_v11  ;;  %v4539_v11 = vld [vmem:[#allocation42_spill] sm:$0xff] }
 0x1c2   : > { %1612 = vst.msk [vmem:[%s3232_s16 + $0x58] sm:$0xff] %vm1600_vm0, %v3374_v49  ;;  %1615 = vst.msk [vmem:[%s3232_s16 + $0x70] sm:$0xff] %vm1600_vm0, %v3377_v50  ;;  %v1478_v14 = vadd.f32 %v1414_v5, %v1090_v57  ;;  %v1481_v3 = vadd.f32 %v1417_v48, %v1093_v4  ;;  %v706_v4 = vmul.f32 %v3198_v43, %v4536_v45 }
 0x1c3   : > { %v1203_v1 = vpop.permute.xlu1 %1202  ;;  %v1215_v2 = vpop.permute.xlu0 %1214  ;;  %v1097_v8 = vadd.f32 %v1033_v12, %v709_v10  ;;  %v711_v12 = vmul.f32 %v3198_v43, %v4539_v11 }
 0x1c4   : > { %v3396_v56 = vadd.f32 %v3225_v58, %v1478_v14  ;;  %v3399_v37 = vadd.f32 %v3225_v58, %v1481_v3  ;;  %v1416_v7 = vmul.f32 %v3205_v46, %v1203_v1  ;;  %v1419_v57 = vmul.f32 %v3205_v46, %v1215_v2 }
 0x1c5   : > { %v1094_v48 = vadd.f32 %v1030_v59, %v706_v4  ;;  %v1035_v14 = vmul.f32 %v3190_v39, %v3068_v18  ;;  %v4538_v59 = vld [vmem:[#allocation37_spill] sm:$0xff]  ;;  %v1034_v4 = vmul.f32 %v3190_v39, %v3064_v13  ;;  %v4541_v13 = vld [vmem:[#allocation44_spill] sm:$0xff] }
 0x1c6   : > { %1614 = vst.msk [vmem:[%s3232_s16 + $0x68] sm:$0xff] %vm1600_vm0, %v3396_v56  ;;  %1617 = vst.msk [vmem:[%s3232_s16 + $0x80] sm:$0xff] %vm1600_vm0, %v3399_v37  ;;  %v1480_v16 = vadd.f32 %v1416_v7, %v1092_v63  ;;  %v1483_v5 = vadd.f32 %v1419_v57, %v1095_v6  ;;  %v708_v6 = vmul.f32 %v3198_v43, %v4538_v59 }
 0x1c7   : > { %v1211_v3 = vpop.permute.xlu1 %1210  ;;  %v1223_v1 = vpop.permute.xlu0 %1222  ;;  %v1099_v10 = vadd.f32 %v1035_v14, %v711_v12  ;;  %v713_v14 = vmul.f32 %v3198_v43, %v4541_v13 }
 0x1c8   : > { %v3418_v2 = vadd.f32 %v3225_v58, %v1480_v16  ;;  %v3421_v45 = vadd.f32 %v3225_v58, %v1483_v5  ;;  %v1418_v9 = vmul.f32 %v3205_v46, %v1211_v3  ;;  %v1421_v63 = vmul.f32 %v3205_v46, %v1223_v1 }
 0x1c9   : > { %v1096_v57 = vadd.f32 %v1032_v60, %v708_v6  ;;  %v1037_v16 = vmul.f32 %v3190_v39, %v3074_v20  ;;  %v4540_v60 = vld [vmem:[#allocation39_spill] sm:$0xff]  ;;  %v1036_v6 = vmul.f32 %v3190_v39, %v3070_v15  ;;  %v4543_v15 = vld [vmem:[#allocation46_spill] sm:$0xff] }
 0x1ca   : > { %1616 = vst.msk [vmem:[%s3232_s16 + $0x78] sm:$0xff] %vm1600_vm0, %v3418_v2  ;;  %1619 = vst.msk [vmem:[%s3232_s16 + $0x90] sm:$0xff] %vm1600_vm0, %v3421_v45  ;;  %v1482_v18 = vadd.f32 %v1418_v9, %v1094_v48  ;;  %v1485_v7 = vadd.f32 %v1421_v63, %v1097_v8  ;;  %v710_v8 = vmul.f32 %v3198_v43, %v4540_v60 }
 0x1cb   : > { %v1219_v5 = vpop.permute.xlu1 %1218  ;;  %v1231_v3 = vpop.permute.xlu0 %1230  ;;  %v1101_v12 = vadd.f32 %v1037_v16, %v713_v14  ;;  %v715_v16 = vmul.f32 %v3198_v43, %v4543_v15 }
 0x1cc   : > { %v3440_v1 = vadd.f32 %v3225_v58, %v1482_v18  ;;  %v3443_v59 = vadd.f32 %v3225_v58, %v1485_v7  ;;  %v1420_v11 = vmul.f32 %v3205_v46, %v1219_v5  ;;  %v1423_v48 = vmul.f32 %v3205_v46, %v1231_v3 }
 0x1cd   : > { %v1098_v63 = vadd.f32 %v1034_v4, %v710_v8  ;;  %v1039_v18 = vmul.f32 %v3190_v39, %v3080_v22  ;;  %v4542_v4 = vld [vmem:[#allocation41_spill] sm:$0xff]  ;;  %v1038_v8 = vmul.f32 %v3190_v39, %v3076_v17  ;;  %v4545_v17 = vld [vmem:[#allocation48_spill] sm:$0xff] }
 0x1ce   : > { %1618 = vst.msk [vmem:[%s3232_s16 + $0x88] sm:$0xff] %vm1600_vm0, %v3440_v1  ;;  %1621 = vst.msk [vmem:[%s3232_s16 + $0xa0] sm:$0xff] %vm1600_vm0, %v3443_v59  ;;  %v1484_v20 = vadd.f32 %v1420_v11, %v1096_v57  ;;  %v1487_v9 = vadd.f32 %v1423_v48, %v1099_v10  ;;  %v712_v10 = vmul.f32 %v3198_v43, %v4542_v4 }
 0x1cf   : > { %v1227_v7 = vpop.permute.xlu1 %1226  ;;  %v1239_v5 = vpop.permute.xlu0 %1238  ;;  %v1103_v14 = vadd.f32 %v1039_v18, %v715_v16  ;;  %v717_v18 = vmul.f32 %v3198_v43, %v4545_v17 }
 0x1d0   : > { %v3462_v3 = vadd.f32 %v3225_v58, %v1484_v20  ;;  %v3465_v60 = vadd.f32 %v3225_v58, %v1487_v9  ;;  %v1422_v13 = vmul.f32 %v3205_v46, %v1227_v7  ;;  %v1425_v57 = vmul.f32 %v3205_v46, %v1239_v5 }
 0x1d1   : > { %v1100_v48 = vadd.f32 %v1036_v6, %v712_v10  ;;  %v1041_v20 = vmul.f32 %v3190_v39, %v3086_v24  ;;  %v4544_v6 = vld [vmem:[#allocation43_spill] sm:$0xff]  ;;  %v1040_v10 = vmul.f32 %v3190_v39, %v3082_v19  ;;  %v4547_v19 = vld [vmem:[#allocation50_spill] sm:$0xff] }
 0x1d2   : > { %1620 = vst.msk [vmem:[%s3232_s16 + $0x98] sm:$0xff] %vm1600_vm0, %v3462_v3  ;;  %1623 = vst.msk [vmem:[%s3232_s16 + $0xb0] sm:$0xff] %vm1600_vm0, %v3465_v60  ;;  %v1486_v22 = vadd.f32 %v1422_v13, %v1098_v63  ;;  %v1489_v11 = vadd.f32 %v1425_v57, %v1101_v12  ;;  %v714_v12 = vmul.f32 %v3198_v43, %v4544_v6 }
 0x1d3   : > { %v1235_v9 = vpop.permute.xlu1 %1234  ;;  %v1247_v7 = vpop.permute.xlu0 %1246  ;;  %v1105_v16 = vadd.f32 %v1041_v20, %v717_v18  ;;  %v719_v20 = vmul.f32 %v3198_v43, %v4547_v19 }
 0x1d4   : > { %v3484_v5 = vadd.f32 %v3225_v58, %v1486_v22  ;;  %v3487_v4 = vadd.f32 %v3225_v58, %v1489_v11  ;;  %v1424_v15 = vmul.f32 %v3205_v46, %v1235_v9  ;;  %v1427_v63 = vmul.f32 %v3205_v46, %v1247_v7 }
 0x1d5   : > { %v1102_v57 = vadd.f32 %v1038_v8, %v714_v12  ;;  %v1043_v22 = vmul.f32 %v3190_v39, %v3092_v26  ;;  %v4546_v8 = vld [vmem:[#allocation45_spill] sm:$0xff]  ;;  %v1042_v12 = vmul.f32 %v3190_v39, %v3088_v21  ;;  %v4549_v21 = vld [vmem:[#allocation52_spill] sm:$0xff] }
 0x1d6   : > { %1622 = vst.msk [vmem:[%s3232_s16 + $0xa8] sm:$0xff] %vm1600_vm0, %v3484_v5  ;;  %1625 = vst.msk [vmem:[%s3232_s16 + $0xc0] sm:$0xff] %vm1600_vm0, %v3487_v4  ;;  %v1488_v24 = vadd.f32 %v1424_v15, %v1100_v48  ;;  %v1491_v13 = vadd.f32 %v1427_v63, %v1103_v14  ;;  %v716_v14 = vmul.f32 %v3198_v43, %v4546_v8 }
 0x1d7   : > { %v1243_v11 = vpop.permute.xlu1 %1242  ;;  %v1255_v9 = vpop.permute.xlu0 %1254  ;;  %v1107_v18 = vadd.f32 %v1043_v22, %v719_v20  ;;  %v721_v22 = vmul.f32 %v3198_v43, %v4549_v21 }
 0x1d8   : > { %v3506_v7 = vadd.f32 %v3225_v58, %v1488_v24  ;;  %v3509_v6 = vadd.f32 %v3225_v58, %v1491_v13  ;;  %v1426_v17 = vmul.f32 %v3205_v46, %v1243_v11  ;;  %v1429_v48 = vmul.f32 %v3205_v46, %v1255_v9 }
 0x1d9   : > { %v1104_v63 = vadd.f32 %v1040_v10, %v716_v14  ;;  %v1045_v24 = vmul.f32 %v3190_v39, %v3098_v28  ;;  %v4548_v10 = vld [vmem:[#allocation47_spill] sm:$0xff]  ;;  %v1044_v14 = vmul.f32 %v3190_v39, %v3094_v23  ;;  %v4551_v23 = vld [vmem:[#allocation54_spill] sm:$0xff] }
 0x1da   : > { %1624 = vst.msk [vmem:[%s3232_s16 + $0xb8] sm:$0xff] %vm1600_vm0, %v3506_v7  ;;  %1627 = vst.msk [vmem:[%s3232_s16 + $0xd0] sm:$0xff] %vm1600_vm0, %v3509_v6  ;;  %v1490_v26 = vadd.f32 %v1426_v17, %v1102_v57  ;;  %v1493_v15 = vadd.f32 %v1429_v48, %v1105_v16  ;;  %v718_v16 = vmul.f32 %v3198_v43, %v4548_v10 }
 0x1db   : > { %v1251_v13 = vpop.permute.xlu1 %1250  ;;  %v1263_v11 = vpop.permute.xlu0 %1262  ;;  %v1109_v20 = vadd.f32 %v1045_v24, %v721_v22  ;;  %v723_v24 = vmul.f32 %v3198_v43, %v4551_v23 }
 0x1dc   : > { %v3528_v9 = vadd.f32 %v3225_v58, %v1490_v26  ;;  %v3531_v8 = vadd.f32 %v3225_v58, %v1493_v15  ;;  %v1428_v19 = vmul.f32 %v3205_v46, %v1251_v13  ;;  %v1431_v57 = vmul.f32 %v3205_v46, %v1263_v11 }
 0x1dd   : > { %v1106_v48 = vadd.f32 %v1042_v12, %v718_v16  ;;  %v1047_v26 = vmul.f32 %v3190_v39, %v3104_v30  ;;  %v4550_v12 = vld [vmem:[#allocation49_spill] sm:$0xff]  ;;  %v1046_v16 = vmul.f32 %v3190_v39, %v3100_v25  ;;  %v4553_v25 = vld [vmem:[#allocation56_spill] sm:$0xff] }
 0x1de   : > { %1626 = vst.msk [vmem:[%s3232_s16 + $0xc8] sm:$0xff] %vm1600_vm0, %v3528_v9  ;;  %1629 = vst.msk [vmem:[%s3232_s16 + $0xe0] sm:$0xff] %vm1600_vm0, %v3531_v8  ;;  %v1492_v28 = vadd.f32 %v1428_v19, %v1104_v63  ;;  %v1495_v17 = vadd.f32 %v1431_v57, %v1107_v18  ;;  %v720_v18 = vmul.f32 %v3198_v43, %v4550_v12 }
 0x1df   : > { %v1259_v15 = vpop.permute.xlu1 %1258  ;;  %v1271_v13 = vpop.permute.xlu0 %1270  ;;  %v1111_v22 = vadd.f32 %v1047_v26, %v723_v24  ;;  %v725_v26 = vmul.f32 %v3198_v43, %v4553_v25 }
 0x1e0   : > { %v3550_v11 = vadd.f32 %v3225_v58, %v1492_v28  ;;  %v3553_v10 = vadd.f32 %v3225_v58, %v1495_v17  ;;  %v1430_v21 = vmul.f32 %v3205_v46, %v1259_v15  ;;  %v1433_v63 = vmul.f32 %v3205_v46, %v1271_v13 }
 0x1e1   : > { %v1108_v57 = vadd.f32 %v1044_v14, %v720_v18  ;;  %v1049_v28 = vmul.f32 %v3190_v39, %v3110_v32  ;;  %v4552_v14 = vld [vmem:[#allocation51_spill] sm:$0xff]  ;;  %v1048_v18 = vmul.f32 %v3190_v39, %v3106_v27  ;;  %v4555_v27 = vld [vmem:[#allocation58_spill] sm:$0xff] }
 0x1e2   : > { %1628 = vst.msk [vmem:[%s3232_s16 + $0xd8] sm:$0xff] %vm1600_vm0, %v3550_v11  ;;  %1631 = vst.msk [vmem:[%s3232_s16 + $0xf0] sm:$0xff] %vm1600_vm0, %v3553_v10  ;;  %v1494_v30 = vadd.f32 %v1430_v21, %v1106_v48  ;;  %v1497_v19 = vadd.f32 %v1433_v63, %v1109_v20  ;;  %v722_v20 = vmul.f32 %v3198_v43, %v4552_v14 }
 0x1e3   : > { %v1267_v17 = vpop.permute.xlu1 %1266  ;;  %v1279_v15 = vpop.permute.xlu0 %1278  ;;  %v1113_v24 = vadd.f32 %v1049_v28, %v725_v26  ;;  %v727_v28 = vmul.f32 %v3198_v43, %v4555_v27 }
 0x1e4   : > { %v3572_v13 = vadd.f32 %v3225_v58, %v1494_v30  ;;  %v3575_v12 = vadd.f32 %v3225_v58, %v1497_v19  ;;  %v1432_v23 = vmul.f32 %v3205_v46, %v1267_v17  ;;  %v1435_v48 = vmul.f32 %v3205_v46, %v1279_v15 }
 0x1e5   : > { %v1110_v63 = vadd.f32 %v1046_v16, %v722_v20  ;;  %v1051_v30 = vmul.f32 %v3190_v39, %v3116_v34  ;;  %v4554_v16 = vld [vmem:[#allocation53_spill] sm:$0xff]  ;;  %v1050_v20 = vmul.f32 %v3190_v39, %v3112_v29  ;;  %v4557_v29 = vld [vmem:[#allocation60_spill] sm:$0xff] }
 0x1e6   : > { %1630 = vst.msk [vmem:[%s3232_s16 + $0xe8] sm:$0xff] %vm1600_vm0, %v3572_v13  ;;  %1633 = vst.msk [vmem:[%s3232_s16 + $0x100] sm:$0xff] %vm1600_vm0, %v3575_v12  ;;  %v1496_v32 = vadd.f32 %v1432_v23, %v1108_v57  ;;  %v1499_v21 = vadd.f32 %v1435_v48, %v1111_v22  ;;  %v724_v22 = vmul.f32 %v3198_v43, %v4554_v16 }
 0x1e7   : > { %v1275_v19 = vpop.permute.xlu1 %1274  ;;  %v1287_v17 = vpop.permute.xlu0 %1286  ;;  %v1115_v26 = vadd.f32 %v1051_v30, %v727_v28  ;;  %v729_v30 = vmul.f32 %v3198_v43, %v4557_v29 }
 0x1e8   : > { %v3594_v15 = vadd.f32 %v3225_v58, %v1496_v32  ;;  %v3597_v14 = vadd.f32 %v3225_v58, %v1499_v21  ;;  %v1434_v25 = vmul.f32 %v3205_v46, %v1275_v19  ;;  %v1437_v57 = vmul.f32 %v3205_v46, %v1287_v17 }
 0x1e9   : > { %v1112_v48 = vadd.f32 %v1048_v18, %v724_v22  ;;  %v1053_v32 = vmul.f32 %v3190_v39, %v3122_v36  ;;  %v4556_v18 = vld [vmem:[#allocation55_spill] sm:$0xff]  ;;  %v1052_v22 = vmul.f32 %v3190_v39, %v3118_v31  ;;  %v4559_v31 = vld [vmem:[#allocation62_spill] sm:$0xff] }
 0x1ea   : > { %1632 = vst.msk [vmem:[%s3232_s16 + $0xf8] sm:$0xff] %vm1600_vm0, %v3594_v15  ;;  %1635 = vst.msk [vmem:[%s3232_s16 + $0x110] sm:$0xff] %vm1600_vm0, %v3597_v14  ;;  %v1498_v34 = vadd.f32 %v1434_v25, %v1110_v63  ;;  %v1501_v23 = vadd.f32 %v1437_v57, %v1113_v24  ;;  %v726_v24 = vmul.f32 %v3198_v43, %v4556_v18 }
 0x1eb   : > { %v1283_v21 = vpop.permute.xlu1 %1282  ;;  %v1295_v19 = vpop.permute.xlu0 %1294  ;;  %v1117_v28 = vadd.f32 %v1053_v32, %v729_v30  ;;  %v731_v32 = vmul.f32 %v3198_v43, %v4559_v31 }
 0x1ec   : > { %v3616_v17 = vadd.f32 %v3225_v58, %v1498_v34  ;;  %v3619_v16 = vadd.f32 %v3225_v58, %v1501_v23  ;;  %v1436_v27 = vmul.f32 %v3205_v46, %v1283_v21  ;;  %v1439_v63 = vmul.f32 %v3205_v46, %v1295_v19 }
 0x1ed   : > { %v1114_v57 = vadd.f32 %v1050_v20, %v726_v24  ;;  %v1055_v34 = vmul.f32 %v3190_v39, %v3128_v38  ;;  %v4558_v20 = vld [vmem:[#allocation57_spill] sm:$0xff]  ;;  %v1054_v24 = vmul.f32 %v3190_v39, %v3124_v33  ;;  %v4562_v33 = vld [vmem:[#allocation64_spill] sm:$0xff] }
 0x1ee   : > { %1634 = vst.msk [vmem:[%s3232_s16 + $0x108] sm:$0xff] %vm1600_vm0, %v3616_v17  ;;  %1637 = vst.msk [vmem:[%s3232_s16 + $0x120] sm:$0xff] %vm1600_vm0, %v3619_v16  ;;  %v1500_v36 = vadd.f32 %v1436_v27, %v1112_v48  ;;  %v1503_v25 = vadd.f32 %v1439_v63, %v1115_v26  ;;  %v728_v26 = vmul.f32 %v3198_v43, %v4558_v20 }
 0x1ef   : > { %v1291_v23 = vpop.permute.xlu1 %1290  ;;  %v1303_v21 = vpop.permute.xlu0 %1302  ;;  %v1119_v30 = vadd.f32 %v1055_v34, %v731_v32  ;;  %v733_v34 = vmul.f32 %v3198_v43, %v4562_v33 }
 0x1f0   : > { %v3638_v19 = vadd.f32 %v3225_v58, %v1500_v36  ;;  %v3641_v18 = vadd.f32 %v3225_v58, %v1503_v25  ;;  %v1438_v29 = vmul.f32 %v3205_v46, %v1291_v23  ;;  %v1441_v48 = vmul.f32 %v3205_v46, %v1303_v21 }
 0x1f1   : > { %v1116_v63 = vadd.f32 %v1052_v22, %v728_v26  ;;  %v1057_v36 = vmul.f32 %v3190_v39, %v3134_v40  ;;  %v4561_v22 = vld [vmem:[#allocation59_spill] sm:$0xff]  ;;  %v1056_v26 = vmul.f32 %v3190_v39, %v3130_v35  ;;  %v4565_v35 = vld [vmem:[#allocation66_spill] sm:$0xff] }
 0x1f2   : > { %1636 = vst.msk [vmem:[%s3232_s16 + $0x118] sm:$0xff] %vm1600_vm0, %v3638_v19  ;;  %1639 = vst.msk [vmem:[%s3232_s16 + $0x130] sm:$0xff] %vm1600_vm0, %v3641_v18  ;;  %v1502_v38 = vadd.f32 %v1438_v29, %v1114_v57  ;;  %v1505_v27 = vadd.f32 %v1441_v48, %v1117_v28  ;;  %v730_v28 = vmul.f32 %v3198_v43, %v4561_v22 }
 0x1f3   : > { %v1299_v25 = vpop.permute.xlu1 %1298  ;;  %v1311_v23 = vpop.permute.xlu0 %1310  ;;  %v1121_v32 = vadd.f32 %v1057_v36, %v733_v34  ;;  %v735_v36 = vmul.f32 %v3198_v43, %v4565_v35 }
 0x1f4   : > { %v3660_v21 = vadd.f32 %v3225_v58, %v1502_v38  ;;  %v3663_v20 = vadd.f32 %v3225_v58, %v1505_v27  ;;  %v1440_v31 = vmul.f32 %v3205_v46, %v1299_v25  ;;  %v1443_v57 = vmul.f32 %v3205_v46, %v1311_v23 }
 0x1f5   : > { %v1118_v48 = vadd.f32 %v1054_v24, %v730_v28  ;;  %v1059_v38 = vmul.f32 %v3190_v39, %v3140_v42  ;;  %v4564_v24 = vld [vmem:[#allocation61_spill] sm:$0xff]  ;;  %v4566_v28 = vld [vmem:[#allocation18_spill] sm:$0xff] }
 0x1f6   : > { %4560 = vst [vmem:[#allocation22_spill] sm:$0xff] %v3663_v20  ;;  %1638 = vst.msk [vmem:[%s3232_s16 + $0x128] sm:$0xff] %vm1600_vm0, %v3660_v21  ;;  %v1504_v40 = vadd.f32 %v1440_v31, %v1116_v63  ;;  %v1507_v29 = vadd.f32 %v1443_v57, %v1119_v30  ;;  %v732_v30 = vmul.f32 %v3198_v43, %v4564_v24 }
 0x1f7   : > { %1641 = vst.msk [vmem:[%s3232_s16 + $0x140] sm:$0xff] %vm1600_vm0, %v3663_v20  ;;  %v1307_v27 = vpop.permute.xlu1 %1306  ;;  %v1319_v25 = vpop.permute.xlu0 %1318  ;;  %v1058_v34 = vmul.f32 %v3190_v39, %v4566_v28 }
 0x1f8   : > { %v3682_v23 = vadd.f32 %v3225_v58, %v1504_v40  ;;  %v3685_v22 = vadd.f32 %v3225_v58, %v1507_v29  ;;  %v1442_v33 = vmul.f32 %v3205_v46, %v1307_v27  ;;  %v1445_v63 = vmul.f32 %v3205_v46, %v1319_v25  ;;  %v4567_v29 = vld [vmem:[#allocation81_spill] sm:$0xff] }
 0x1f9   : > { %v1120_v57 = vadd.f32 %v1056_v26, %v732_v30  ;;  %v1123_v40 = vadd.f32 %v1059_v38, %v735_v36  ;;  %v1061_v27 = vmul.f32 %v3190_v39, %v4567_v29  ;;  %v4570_v26 = vld [vmem:[#allocation63_spill] sm:$0xff] }
 0x1fa   : > { %4563 = vst [vmem:[#allocation19_spill] sm:$0xff] %v3685_v22  ;;  %1640 = vst.msk [vmem:[%s3232_s16 + $0x138] sm:$0xff] %vm1600_vm0, %v3682_v23  ;;  %v1506_v42 = vadd.f32 %v1442_v33, %v1118_v48  ;;  %v1509_v31 = vadd.f32 %v1445_v63, %v1121_v32  ;;  %v734_v32 = vmul.f32 %v3198_v43, %v4570_v26  ;;  %v4571_v33 = vld [vmem:[#allocation68_spill] sm:$0xff]  ;;  %v4573_v29 = vld [vmem:[#allocation83_spill] sm:$0xff] }
 0x1fb   : > { %1643 = vst.msk [vmem:[%s3232_s16 + $0x150] sm:$0xff] %vm1600_vm0, %v3685_v22  ;;  %v1315_v25 = vpop.permute.xlu1 %1314  ;;  %v1327_v24 = vpop.permute.xlu0 %1326  ;;  %v737_v38 = vmul.f32 %v3198_v43, %v4571_v33 }
 0x1fc   : > { %v3704_v35 = vadd.f32 %v3225_v58, %v1506_v42  ;;  %v3707_v20 = vadd.f32 %v3225_v58, %v1509_v31  ;;  %v1444_v22 = vmul.f32 %v3205_v46, %v1315_v25  ;;  %v1447_v48 = vmul.f32 %v3205_v46, %v1327_v24  ;;  %v4572_v42 = vld [vmem:[#allocation80_spill] sm:$0xff] }
 0x1fd   : > { %v1122_v36 = vadd.f32 %v1058_v34, %v734_v32  ;;  %v1060_v31 = vmul.f32 %v3190_v39, %v4572_v42  ;;  %v1125_v28 = vadd.f32 %v1061_v27, %v737_v38  ;;  %v1063_v25 = vmul.f32 %v3190_v39, %v4573_v29  ;;  %v4579_v29 = vld [vmem:[#allocation85_spill] sm:$0xff] }
 0x1fe   : > { %4568 = vst [vmem:[#allocation24_spill] sm:$0xff] %v3704_v35  ;;  %4569 = vst [vmem:[#allocation21_spill] sm:$0xff] %v3707_v20  ;;  %v1508_v63 = vadd.f32 %v1444_v22, %v1120_v57  ;;  %v1511_v30 = vadd.f32 %v1447_v48, %v1123_v40  ;;  %v4576_v57 = vld [vmem:[#allocation65_spill] sm:$0xff]  ;;  %v4577_v40 = vld [vmem:[#allocation70_spill] sm:$0xff] }
 0x1ff   : > { %1642 = vst.msk [vmem:[%s3232_s16 + $0x148] sm:$0xff] %vm1600_vm0, %v3704_v35  ;;  %1645 = vst.msk [vmem:[%s3232_s16 + $0x160] sm:$0xff] %vm1600_vm0, %v3707_v20  ;;  %v1323_v24 = vpop.permute.xlu1 %1322  ;;  %v1335_v26 = vpop.permute.xlu0 %1334  ;;  %v736_v34 = vmul.f32 %v3198_v43, %v4576_v57  ;;  %v739_v27 = vmul.f32 %v3198_v43, %v4577_v40 }
 0x200   : > { %v3726_v33 = vadd.f32 %v3225_v58, %v1508_v63  ;;  %v3729_v35 = vadd.f32 %v3225_v58, %v1511_v30  ;;  %v1446_v20 = vmul.f32 %v3205_v46, %v1323_v24  ;;  %v1449_v22 = vmul.f32 %v3205_v46, %v1335_v26  ;;  %v4578_v63 = vld [vmem:[#allocation82_spill] sm:$0xff] }
 0x201   : > { %v1124_v38 = vadd.f32 %v1060_v31, %v736_v34  ;;  %v1062_v30 = vmul.f32 %v3190_v39, %v4578_v63  ;;  %v1127_v42 = vadd.f32 %v1063_v25, %v739_v27  ;;  %v1065_v24 = vmul.f32 %v3190_v39, %v4579_v29  ;;  %v4585_v29 = vld [vmem:[#allocation8_spill] sm:$0xff] }
 0x202   : > { %4574 = vst [vmem:[#allocation26_spill] sm:$0xff] %v3726_v33  ;;  %4575 = vst [vmem:[#allocation23_spill] sm:$0xff] %v3729_v35  ;;  %v1510_v48 = vadd.f32 %v1446_v20, %v1122_v36  ;;  %v1513_v32 = vadd.f32 %v1449_v22, %v1125_v28  ;;  %v4582_v36 = vld [vmem:[#allocation67_spill] sm:$0xff]  ;;  %v4583_v28 = vld [vmem:[#allocation72_spill] sm:$0xff] }
 0x203   : > { %1644 = vst.msk [vmem:[%s3232_s16 + $0x158] sm:$0xff] %vm1600_vm0, %v3726_v33  ;;  %1647 = vst.msk [vmem:[%s3232_s16 + $0x170] sm:$0xff] %vm1600_vm0, %v3729_v35  ;;  %v1331_v26 = vpop.permute.xlu1 %1330  ;;  %v1343_v57 = vpop.permute.xlu0 %1342  ;;  %v738_v31 = vmul.f32 %v3198_v43, %v4582_v36  ;;  %v741_v25 = vmul.f32 %v3198_v43, %v4583_v28 }
 0x204   : > { %v3748_v40 = vadd.f32 %v3225_v58, %v1510_v48  ;;  %v3751_v33 = vadd.f32 %v3225_v58, %v1513_v32  ;;  %v1448_v35 = vmul.f32 %v3205_v46, %v1331_v26  ;;  %v1451_v20 = vmul.f32 %v3205_v46, %v1343_v57  ;;  %v4584_v48 = vld [vmem:[#allocation84_spill] sm:$0xff] }
 0x205   : > { %v1126_v27 = vadd.f32 %v1062_v30, %v738_v31  ;;  %v1064_v32 = vmul.f32 %v3190_v39, %v4584_v48  ;;  %v1129_v63 = vadd.f32 %v1065_v24, %v741_v25  ;;  %v1067_v26 = vmul.f32 %v3190_v39, %v4585_v29  ;;  %v4591_v29 = vld [vmem:[#allocation9_spill] sm:$0xff] }
 0x206   : > { %4580 = vst [vmem:[#allocation28_spill] sm:$0xff] %v3748_v40  ;;  %4581 = vst [vmem:[#allocation25_spill] sm:$0xff] %v3751_v33  ;;  %v1512_v22 = vadd.f32 %v1448_v35, %v1124_v38  ;;  %v1515_v34 = vadd.f32 %v1451_v20, %v1127_v42  ;;  %v4588_v38 = vld [vmem:[#allocation69_spill] sm:$0xff]  ;;  %v4589_v42 = vld [vmem:[#allocation74_spill] sm:$0xff] }
 0x207   : > { %1646 = vst.msk [vmem:[%s3232_s16 + $0x168] sm:$0xff] %vm1600_vm0, %v3748_v40  ;;  %1649 = vst.msk [vmem:[%s3232_s16 + $0x180] sm:$0xff] %vm1600_vm0, %v3751_v33  ;;  %v1339_v57 = vpop.permute.xlu1 %1338  ;;  %v1351_v36 = vpop.permute.xlu0 %1350  ;;  %v740_v30 = vmul.f32 %v3198_v43, %v4588_v38  ;;  %v743_v24 = vmul.f32 %v3198_v43, %v4589_v42 }
 0x208   : > { %v3770_v28 = vadd.f32 %v3225_v58, %v1512_v22  ;;  %v3773_v40 = vadd.f32 %v3225_v58, %v1515_v34  ;;  %v1450_v33 = vmul.f32 %v3205_v46, %v1339_v57  ;;  %v1453_v35 = vmul.f32 %v3205_v46, %v1351_v36  ;;  %v4590_v22 = vld [vmem:[#allocation86_spill] sm:$0xff] }
 0x209   : > { %v1128_v25 = vadd.f32 %v1064_v32, %v740_v30  ;;  %v1066_v34 = vmul.f32 %v3190_v39, %v4590_v22  ;;  %v1131_v48 = vadd.f32 %v1067_v26, %v743_v24  ;;  %v1069_v57 = vmul.f32 %v3190_v39, %v4591_v29  ;;  %v4597_v29 = vld [vmem:[#allocation10_spill] sm:$0xff] }
 0x20a   : > { %4586 = vst [vmem:[#allocation30_spill] sm:$0xff] %v3770_v28  ;;  %4587 = vst [vmem:[#allocation27_spill] sm:$0xff] %v3773_v40  ;;  %v1514_v20 = vadd.f32 %v1450_v33, %v1126_v27  ;;  %v1517_v31 = vadd.f32 %v1453_v35, %v1129_v63  ;;  %v4594_v27 = vld [vmem:[#allocation71_spill] sm:$0xff]  ;;  %v4595_v63 = vld [vmem:[#allocation76_spill] sm:$0xff] }
 0x20b   : > { %1648 = vst.msk [vmem:[%s3232_s16 + $0x178] sm:$0xff] %vm1600_vm0, %v3770_v28  ;;  %1651 = vst.msk [vmem:[%s3232_s16 + $0x190] sm:$0xff] %vm1600_vm0, %v3773_v40  ;;  %v1347_v36 = vpop.permute.xlu1 %1346  ;;  %v1359_v38 = vpop.permute.xlu0 %1358  ;;  %v742_v32 = vmul.f32 %v3198_v43, %v4594_v27  ;;  %v745_v26 = vmul.f32 %v3198_v43, %v4595_v63 }
 0x20c   : > { %v3792_v42 = vadd.f32 %v3225_v58, %v1514_v20  ;;  %v3795_v28 = vadd.f32 %v3225_v58, %v1517_v31  ;;  %v1452_v40 = vmul.f32 %v3205_v46, %v1347_v36  ;;  %v1455_v33 = vmul.f32 %v3205_v46, %v1359_v38  ;;  %v4596_v20 = vld [vmem:[#allocation11_spill] sm:$0xff] }
 0x20d   : > { %v1130_v24 = vadd.f32 %v1066_v34, %v742_v32  ;;  %v1068_v31 = vmul.f32 %v3190_v39, %v4596_v20  ;;  %v1133_v22 = vadd.f32 %v1069_v57, %v745_v26  ;;  %v1071_v36 = vmul.f32 %v3190_v39, %v4597_v29  ;;  %v4603_v29 = vld [vmem:[#allocation12_spill] sm:$0xff] }
 0x20e   : > { %4592 = vst [vmem:[#allocation32_spill] sm:$0xff] %v3792_v42  ;;  %4593 = vst [vmem:[#allocation29_spill] sm:$0xff] %v3795_v28  ;;  %v1516_v35 = vadd.f32 %v1452_v40, %v1128_v25  ;;  %v1519_v30 = vadd.f32 %v1455_v33, %v1131_v48  ;;  %v4600_v25 = vld [vmem:[#allocation73_spill] sm:$0xff]  ;;  %v4601_v48 = vld [vmem:[#allocation78_spill] sm:$0xff] }
 0x20f   : > { %1650 = vst.msk [vmem:[%s3232_s16 + $0x188] sm:$0xff] %vm1600_vm0, %v3792_v42  ;;  %1653 = vst.msk [vmem:[%s3232_s16 + $0x1a0] sm:$0xff] %vm1600_vm0, %v3795_v28  ;;  %v1355_v38 = vpop.permute.xlu1 %1354  ;;  %v1367_v27 = vpop.permute.xlu0 %1366  ;;  %v744_v34 = vmul.f32 %v3198_v43, %v4600_v25  ;;  %v747_v57 = vmul.f32 %v3198_v43, %v4601_v48 }
 0x210   : > { %v3814_v63 = vadd.f32 %v3225_v58, %v1516_v35  ;;  %v3817_v42 = vadd.f32 %v3225_v58, %v1519_v30  ;;  %v1454_v28 = vmul.f32 %v3205_v46, %v1355_v38  ;;  %v1457_v40 = vmul.f32 %v3205_v46, %v1367_v27  ;;  %v4602_v35 = vld [vmem:[#allocation13_spill] sm:$0xff] }
 0x211   : > { %v1132_v26 = vadd.f32 %v1068_v31, %v744_v34  ;;  %v1070_v30 = vmul.f32 %v3190_v39, %v4602_v35  ;;  %v1135_v20 = vadd.f32 %v1071_v36, %v747_v57  ;;  %v1073_v38 = vmul.f32 %v3190_v39, %v4603_v29  ;;  %v4609_v29 = vld [vmem:[#allocation14_spill] sm:$0xff] }
 0x212   : > { %4598 = vst [vmem:[#allocation34_spill] sm:$0xff] %v3814_v63  ;;  %4599 = vst [vmem:[#allocation31_spill] sm:$0xff] %v3817_v42  ;;  %v1518_v33 = vadd.f32 %v1454_v28, %v1130_v24  ;;  %v1521_v32 = vadd.f32 %v1457_v40, %v1133_v22  ;;  %v4606_v24 = vld [vmem:[#allocation75_spill] sm:$0xff] }
 0x213   : > { %1652 = vst.msk [vmem:[%s3232_s16 + $0x198] sm:$0xff] %vm1600_vm0, %v3814_v63  ;;  %1655 = vst.msk [vmem:[%s3232_s16 + $0x1b0] sm:$0xff] %vm1600_vm0, %v3817_v42  ;;  %v1363_v27 = vpop.permute.xlu1 %1362  ;;  %v1375_v25 = vpop.permute.xlu0 %1374  ;;  %v746_v31 = vmul.f32 %v3198_v43, %v4606_v24  ;;  %v4607_v22 = vld [vmem:[#allocation79_spill] sm:$0xff] }
 0x214   : > { %v3836_v48 = vadd.f32 %v3225_v58, %v1518_v33  ;;  %v3839_v63 = vadd.f32 %v3225_v58, %v1521_v32  ;;  %v1456_v42 = vmul.f32 %v3205_v46, %v1363_v27  ;;  %v1459_v28 = vmul.f32 %v3205_v46, %v1375_v25  ;;  %v4608_v33 = vld [vmem:[#allocation87_spill] sm:$0xff] }
 0x215   : > { %v749_v36 = vmul.f32 %v3198_v43, %v4607_v22  ;;  %v1134_v57 = vadd.f32 %v1070_v30, %v746_v31  ;;  %v1072_v32 = vmul.f32 %v3190_v39, %v4608_v33  ;;  %v1075_v27 = vmul.f32 %v3190_v39, %v4609_v29 }
 0x216   : > { %4604 = vst [vmem:[#allocation36_spill] sm:$0xff] %v3836_v48  ;;  %4605 = vst [vmem:[#allocation33_spill] sm:$0xff] %v3839_v63  ;;  %v1520_v40 = vadd.f32 %v1456_v42, %v1132_v26  ;;  %v1523_v34 = vadd.f32 %v1459_v28, %v1135_v20  ;;  %v4610_v26 = vld [vmem:[#allocation77_spill] sm:$0xff]  ;;  %v4611_v20 = vld [vmem:[#allocation16_spill] sm:$0xff] }
 0x217   : > { %1654 = vst.msk [vmem:[%s3232_s16 + $0x1a8] sm:$0xff] %vm1600_vm0, %v3836_v48  ;;  %1657 = vst.msk [vmem:[%s3232_s16 + $0x1c0] sm:$0xff] %vm1600_vm0, %v3839_v63  ;;  %v1137_v35 = vadd.f32 %v1073_v38, %v749_v36  ;;  %v1371_v25 = vpop.permute.xlu1 %1370  ;;  %v1383_v24 = vpop.permute.xlu0 %1382  ;;  %v748_v30 = vmul.f32 %v3198_v43, %v4610_v26  ;;  %v751_v38 = vmul.f32 %v3198_v43, %v4611_v20 }
 0x218   : > { %v3858_v22 = vadd.f32 %v3225_v58, %v1520_v40  ;;  %v3861_v48 = vadd.f32 %v3225_v58, %v1523_v34  ;;  %v1458_v63 = vmul.f32 %v3205_v46, %v1371_v25  ;;  %v1461_v42 = vmul.f32 %v3205_v46, %v1383_v24  ;;  %v4612_v40 = vld [vmem:[#allocation88_spill] sm:$0xff] }
 0x219   : > { %v1136_v36 = vadd.f32 %v1072_v32, %v748_v30  ;;  %v1074_v34 = vmul.f32 %v3190_v39, %v4612_v40  ;;  %v1139_v33 = vadd.f32 %v1075_v27, %v751_v38  ;;  %v4614_v38 = vld [vmem:[#allocation89_spill] sm:$0xff] }
 0x21a   : > { %1656 = vst.msk [vmem:[%s3232_s16 + $0x1b8] sm:$0xff] %vm1600_vm0, %v3858_v22  ;;  %1659 = vst.msk [vmem:[%s3232_s16 + $0x1d0] sm:$0xff] %vm1600_vm0, %v3861_v48  ;;  %v1522_v28 = vadd.f32 %v1458_v63, %v1134_v57  ;;  %v1525_v31 = vadd.f32 %v1461_v42, %v1137_v35  ;;  %v4613_v57 = vld [vmem:[#allocation15_spill] sm:$0xff] }
 0x21b   : > { %v1379_v29 = vpop.permute.xlu1 %1378  ;;  %v1391_v25 = vpop.permute.xlu0 %1390  ;;  %v750_v32 = vmul.f32 %v3198_v43, %v4613_v57 }
 0x21c   : > { %v3878_v24 = vadd.f32 %v3225_v58, %v1522_v28  ;;  %v3881_v26 = vadd.f32 %v3225_v58, %v1525_v31  ;;  %v1460_v20 = vmul.f32 %v3205_v46, %v1379_v29  ;;  %v1463_v63 = vmul.f32 %v3205_v46, %v1391_v25  ;;  %v4615_v25 = vld [vmem:[#allocation17_spill] sm:$0xff] }
 0x21d   : > { %v1138_v42 = vadd.f32 %v1074_v34, %v750_v32  ;;  %v1076_v28 = vmul.f32 %v3190_v39, %v4614_v38 }
 0x21e   : > { %1658 = vst.msk [vmem:[%s3232_s16 + $0x1c8] sm:$0xff] %vm1600_vm0, %v3878_v24  ;;  %1661 = vst.msk [vmem:[%s3232_s16 + $0x1e0] sm:$0xff] %vm1600_vm0, %v3881_v26  ;;  %v1524_v35 = vadd.f32 %v1460_v20, %v1136_v36  ;;  %v1527_v27 = vadd.f32 %v1463_v63, %v1139_v33  ;;  %v752_v36 = vmul.f32 %v3198_v43, %v4615_v25 }
 0x21f   : > { %v1387_v30 = vpop.permute.xlu1 %1386 }
 0x220   : > { %v3896_v31 = vadd.f32 %v3225_v58, %v1524_v35  ;;  %v3899_v40 = vadd.f32 %v3225_v58, %v1527_v27  ;;  %v1462_v29 = vmul.f32 %v3205_v46, %v1387_v30  ;;  %v1140_v33 = vadd.f32 %v1076_v28, %v752_v36 }
 0x222   : > { %1660 = vst.msk [vmem:[%s3232_s16 + $0x1d8] sm:$0xff] %vm1600_vm0, %v3896_v31  ;;  %1663 = vst.msk [vmem:[%s3232_s16 + $0x1f0] sm:$0xff] %vm1600_vm0, %v3899_v40  ;;  %v1526_v39 = vadd.f32 %v1462_v29, %v1138_v42 }
 0x223   : > { %v1395_v34 = vpop.permute.xlu1 %1394 }
 0x224   : > { %v3911_v20 = vadd.f32 %v3225_v58, %v1526_v39  ;;  %v1464_v63 = vmul.f32 %v3205_v46, %v1395_v34  ;;  %1668 = sbr.rel (%p2214_p0) target bundleno = 555 (0x22b), region = 36  ;;  %v2436_v46 = vmov (!%p2214_p0), 0.0  }
 0x225   : > { %1670 = vst.msk [vmem:[%s3924_s14] sm:$0x1] (!%p2214_p0), %vm1669_vm1, %v2436_v46  ;;  %1671 = vst.msk [vmem:[%s3927_s17] sm:$0x1] (!%p2214_p0), %vm1669_vm1, %v2436_v46 }
 0x226   : > { %1662 = vst.msk [vmem:[%s3232_s16 + $0x1e8] sm:$0xff] %vm1600_vm0, %v3911_v20  ;;  %v1528_v57 = vadd.f32 %v1464_v63, %v1140_v33 }
 0x228   : > { %v3918_v43 = vadd.f32 %v3225_v58, %v1528_v57 }
 0x22a   : > { %1664 = vst.msk [vmem:[%s3232_s16 + $0x1f8] sm:$0xff] %vm1600_vm0, %v3918_v43 }
 0x22b PF: > { %v1673_v58 = vsel %vm1600_vm0, %v3239_v44, 0.0  ;;  %v4616_v32 = vld [vmem:[#allocation20_spill] sm:$0xff]  ;;  %v1676_v27 = vsel %vm1600_vm0, %v3264_v52, 0.0  ;;  %v1678_v30 = vsel %vm1600_vm0, %v3286_v0, 0.0  ;;  %v1680_v28 = vsel %vm1600_vm0, %v3267_v62, 0.0  ;;  %s4408_s21 = sshll.u32 %s2419_s22, 4 }
 0x22c   : > { %v1674_v35 = vsel %vm1600_vm0, %v4616_v32, 0.0  ;;  %v1682_v25 = vsel %vm1600_vm0, %v3308_v55, 0.0  ;;  %v1684_v39 = vsel %vm1600_vm0, %v3289_v47, 0.0  ;;  %v1686_v33 = vsel %vm1600_vm0, %v3330_v51, 0.0  ;;  %s2039_s26 = sshll.u32 %s3924_s14, 4  ;;  %s4234_s8 = scalar_lea.hbm %s4355_s4, %s4408_s21  ;;  %s4236_s26 = int_to_ptr.vmem [resolvable:$true] %s2039_s26 }
 0x22d   : > { %v1675_v42 = vadd.f32 %v1674_v35, %v1673_v58  ;;  %v1688_v57 = vsel %vm1600_vm0, %v3311_v41, 0.0  ;;  %v1690_v58 = vsel %vm1600_vm0, %v3352_v61, 0.0  ;;  %vm1807_vm2 = vcmask 516096   ;;  %s2019_s10 = scalar_lea.sflag [#allocation3], %s3251_s13  ;;  %s2305_s11 = scalar_lea.vmem %s4236_s26, 16 }
 0x22e   : > { %p2306_p1 = scmp.ne.s32.totalorder %s4236_s26, %s2305_s11  ;;  %s2437_s12 = smov [#allocation2]  }
 0x22f   : > { %v1677_v38 = vadd.f32 %v1676_v27, %v1675_v42  ;;  %v1692_v27 = vsel %vm1600_vm0, %v3333_v53, 0.0  ;;  %s2309_s15 = sshll.u32 %s2437_s12, 4  ;;  %s2310_s15 = int_to_ptr.vmem [resolvable:$false] %s2309_s15 }
 0x230   : > { %p2307_p2 = pnand %p2306_p1, %p2518_p3  ;;  %s2311_s16 = scalar_lea.vmem %s2310_s15, 32 }
 0x231   : > { %v1679_v29 = vadd.f32 %v1678_v30, %v1677_v38  ;;  %v1694_v30 = vsel %vm1600_vm0, %v3374_v49, 0.0  ;;  %p2312_p5 = scmp.lt.s32.totalorder %s4236_s26, %s2310_s15  ;;  %p2313_p6 = scmp.lt.s32.totalorder %s2311_s16, %s2305_s11 }
 0x232   : > { %p2308_p4 = pneg %p2307_p2 }
 0x233   : > { %v1681_v36 = vadd.f32 %v1680_v28, %v1679_v29  ;;  %v1696_v28 = vsel %vm1600_vm0, %v3355_v54, 0.0  ;;  %p2314_p7 = por %p2313_p6, %p2312_p5 }
 0x235   : > { %v1683_v34 = vadd.f32 %v1682_v25, %v1681_v36  ;;  %v1698_v25 = vsel %vm1600_vm0, %v3396_v56, 0.0  ;;  %p2315_p8 = pnand %p2314_p7, %p2308_p4 }
 0x237   : > { %v1685_v63 = vadd.f32 %v1684_v39, %v1683_v34  ;;  %v1700_v39 = vsel %vm1600_vm0, %v3377_v50, 0.0 }
 0x239   : > { %v1687_v46 = vadd.f32 %v1686_v33, %v1685_v63  ;;  %v1702_v33 = vsel %vm1600_vm0, %v3418_v2, 0.0 }
 0x23b   : > { %v1689_v35 = vadd.f32 %v1688_v57, %v1687_v46  ;;  %v1704_v57 = vsel %vm1600_vm0, %v3399_v37, 0.0 }
 0x23d   : > { %v1691_v42 = vadd.f32 %v1690_v58, %v1689_v35  ;;  %v1706_v58 = vsel %vm1600_vm0, %v3440_v1, 0.0 }
 0x23f   : > { %v1693_v38 = vadd.f32 %v1692_v27, %v1691_v42  ;;  %v1708_v27 = vsel %vm1600_vm0, %v3421_v45, 0.0  ;;  %v1810_v42 = vmul.f32 %v3239_v44, %v3239_v44 }
 0x241   : > { %v1695_v29 = vadd.f32 %v1694_v30, %v1693_v38  ;;  %v1811_v38 = vmul.f32 %v4616_v32, %v4616_v32 }
 0x243   : > { %v1697_v36 = vadd.f32 %v1696_v28, %v1695_v29  ;;  %v1812_v28 = vmul.f32 %v3264_v52, %v3264_v52  ;;  %v1710_v29 = vsel %vm1600_vm0, %v3462_v3, 0.0  ;;  %v1875_v32 = vsel %vm1600_vm0, %v1811_v38, 0.0 }
 0x244   : > { %v1718_v38 = vsel %vm1600_vm0, %v3506_v7, 0.0 }
 0x245   : > { %v1699_v34 = vadd.f32 %v1698_v25, %v1697_v36  ;;  %v1813_v36 = vmul.f32 %v3286_v0, %v3286_v0  ;;  %v1877_v52 = vsel %vm1600_vm0, %v1812_v28, 0.0  ;;  %v1815_v0 = vmul.f32 %v3308_v55, %v3308_v55 }
 0x246   : > { %v1817_v55 = vmul.f32 %v3330_v51, %v3330_v51  ;;  %v1819_v51 = vmul.f32 %v3352_v61, %v3352_v61  ;;  %v1821_v61 = vmul.f32 %v3374_v49, %v3374_v49  ;;  %v1823_v49 = vmul.f32 %v3396_v56, %v3396_v56 }
 0x247   : > { %v1701_v63 = vadd.f32 %v1700_v39, %v1699_v34  ;;  %v1712_v39 = vsel %vm1600_vm0, %v3443_v59, 0.0  ;;  %v1874_v34 = vsel %vm1600_vm0, %v1810_v42, 0.0  ;;  %v1825_v56 = vmul.f32 %v3418_v2, %v3418_v2 }
 0x248   : > { %v1827_v2 = vmul.f32 %v3440_v1, %v3440_v1  ;;  %v1829_v1 = vmul.f32 %v3462_v3, %v3462_v3  ;;  %v1831_v3 = vmul.f32 %v3484_v5, %v3484_v5 }
 0x249   : > { %v1703_v46 = vadd.f32 %v1702_v33, %v1701_v63  ;;  %v1814_v33 = vmul.f32 %v3267_v62, %v3267_v62  ;;  %v1714_v63 = vsel %vm1600_vm0, %v3484_v5, 0.0  ;;  %v1816_v62 = vmul.f32 %v3289_v47, %v3289_v47 }
 0x24a   : > { %v1818_v47 = vmul.f32 %v3311_v41, %v3311_v41  ;;  %v1820_v41 = vmul.f32 %v3333_v53, %v3333_v53  ;;  %v1822_v53 = vmul.f32 %v3355_v54, %v3355_v54  ;;  %v1824_v54 = vmul.f32 %v3377_v50, %v3377_v50 }
 0x24b   : > { %v1705_v35 = vadd.f32 %v1704_v57, %v1703_v46  ;;  %v1876_v57 = vadd.f32 %v1875_v32, %v1874_v34  ;;  %v1826_v50 = vmul.f32 %v3399_v37, %v3399_v37  ;;  %v1828_v37 = vmul.f32 %v3421_v45, %v3421_v45 }
 0x24c   : > { %v1830_v45 = vmul.f32 %v3443_v59, %v3443_v59  ;;  %v1832_v59 = vmul.f32 %v3465_v60, %v3465_v60  ;;  %v1833_v5 = vmul.f32 %v3506_v7, %v3506_v7  ;;  %v1835_v7 = vmul.f32 %v3528_v9, %v3528_v9 }
 0x24d   : > { %v1707_v30 = vadd.f32 %v1706_v58, %v1705_v35  ;;  %v1879_v58 = vsel %vm1600_vm0, %v1813_v36, 0.0  ;;  %v1716_v35 = vsel %vm1600_vm0, %v3465_v60, 0.0  ;;  %v1720_v36 = vsel %vm1600_vm0, %v3487_v4, 0.0 }
 0x24e   : > { %v1834_v60 = vmul.f32 %v3487_v4, %v3487_v4  ;;  %v1836_v4 = vmul.f32 %v3509_v6, %v3509_v6 }
 0x24f   : > { %v1709_v25 = vadd.f32 %v1708_v27, %v1707_v30  ;;  %v1878_v27 = vadd.f32 %v1877_v52, %v1876_v57  ;;  %v1881_v30 = vsel %vm1600_vm0, %v1814_v33, 0.0  ;;  %v1722_v33 = vsel %vm1600_vm0, %v3528_v9, 0.0 }
 0x250   : > { %v1724_v57 = vsel %vm1600_vm0, %v3509_v6, 0.0  ;;  %v1837_v9 = vmul.f32 %v3550_v11, %v3550_v11  ;;  %v1838_v6 = vmul.f32 %v3531_v8, %v3531_v8 }
 0x251   : > { %v1711_v44 = vadd.f32 %v1710_v29, %v1709_v25  ;;  %v1880_v28 = vadd.f32 %v1879_v58, %v1878_v27  ;;  %v1883_v25 = vsel %vm1600_vm0, %v1815_v0, 0.0  ;;  %v1889_v58 = vsel %vm1600_vm0, %v1818_v47, 0.0 }
 0x253   : > { %v1713_v46 = vadd.f32 %v1712_v39, %v1711_v44  ;;  %v1882_v39 = vadd.f32 %v1881_v30, %v1880_v28  ;;  %v1885_v44 = vsel %vm1600_vm0, %v1816_v62, 0.0  ;;  %v1891_v62 = vsel %vm1600_vm0, %v1819_v51, 0.0 }
 0x254   : > { %v1728_v30 = vsel %vm1600_vm0, %v3531_v8, 0.0  ;;  %v1840_v8 = vmul.f32 %v3553_v10, %v3553_v10 }
 0x255   : > { %v1715_v42 = vadd.f32 %v1714_v63, %v1713_v46  ;;  %v1884_v32 = vadd.f32 %v1883_v25, %v1882_v39  ;;  %v1887_v63 = vsel %vm1600_vm0, %v1817_v55, 0.0  ;;  %v1730_v55 = vsel %vm1600_vm0, %v3572_v13, 0.0 }
 0x256   : > { %v1895_v39 = vsel %vm1600_vm0, %v1821_v61, 0.0  ;;  %v1740_v61 = vsel %vm1600_vm0, %v3597_v14, 0.0 }
 0x257   : > { %v1717_v29 = vadd.f32 %v1716_v35, %v1715_v42  ;;  %v1886_v46 = vadd.f32 %v1885_v44, %v1884_v32  ;;  %v1726_v35 = vsel %vm1600_vm0, %v3550_v11, 0.0  ;;  %v1734_v32 = vsel %vm1600_vm0, %v3594_v15, 0.0 }
 0x258   : > { %v1839_v11 = vmul.f32 %v3572_v13, %v3572_v13  ;;  %v1841_v13 = vmul.f32 %v3594_v15, %v3594_v15  ;;  %v1843_v15 = vmul.f32 %v3616_v17, %v3616_v17 }
 0x259   : > { %v1719_v34 = vadd.f32 %v1718_v38, %v1717_v29  ;;  %v1888_v27 = vadd.f32 %v1887_v63, %v1886_v46  ;;  %v1893_v29 = vsel %vm1600_vm0, %v1820_v41, 0.0  ;;  %v1899_v63 = vsel %vm1600_vm0, %v1823_v49, 0.0 }
 0x25a   : > { %v1901_v41 = vsel %vm1600_vm0, %v1824_v54, 0.0  ;;  %v1911_v54 = vsel %vm1600_vm0, %v1829_v1, 0.0 }
 0x25b   : > { %v1721_v52 = vadd.f32 %v1720_v36, %v1719_v34  ;;  %v1890_v38 = vadd.f32 %v1889_v58, %v1888_v27  ;;  %v1732_v34 = vsel %vm1600_vm0, %v3553_v10, 0.0  ;;  %v1738_v58 = vsel %vm1600_vm0, %v3616_v17, 0.0 }
 0x25c   : > { %v1842_v10 = vmul.f32 %v3575_v12, %v3575_v12  ;;  %v1845_v17 = vmul.f32 %v3638_v19, %v3638_v19 }
 0x25d   : > { %v1723_v0 = vadd.f32 %v1722_v33, %v1721_v52  ;;  %v1892_v25 = vadd.f32 %v1891_v62, %v1890_v38  ;;  %v1897_v33 = vsel %vm1600_vm0, %v1822_v53, 0.0  ;;  %v1905_v38 = vsel %vm1600_vm0, %v1826_v50, 0.0 }
 0x25f   : > { %v1725_v42 = vadd.f32 %v1724_v57, %v1723_v0  ;;  %v1894_v47 = vadd.f32 %v1893_v29, %v1892_v25  ;;  %v1736_v57 = vsel %vm1600_vm0, %v3575_v12, 0.0  ;;  %v1744_v25 = vsel %vm1600_vm0, %v3619_v16, 0.0 }
 0x260   : > { %v1844_v12 = vmul.f32 %v3597_v14, %v3597_v14  ;;  %v1846_v14 = vmul.f32 %v3619_v16, %v3619_v16  ;;  %v1848_v16 = vmul.f32 %v3641_v18, %v3641_v18 }
 0x261   : > { %v1727_v28 = vadd.f32 %v1726_v35, %v1725_v42  ;;  %v1896_v52 = vadd.f32 %v1895_v39, %v1894_v47  ;;  %v1903_v42 = vsel %vm1600_vm0, %v1825_v56, 0.0  ;;  %v1909_v39 = vsel %vm1600_vm0, %v1828_v37, 0.0 }
 0x262   : > { %v1750_v56 = vsel %vm1600_vm0, %v3682_v23, 0.0 }
 0x263   : > { %v1729_v36 = vadd.f32 %v1728_v30, %v1727_v28  ;;  %v1898_v46 = vadd.f32 %v1897_v33, %v1896_v52  ;;  %v1742_v28 = vsel %vm1600_vm0, %v3638_v19, 0.0  ;;  %v1748_v33 = vsel %vm1600_vm0, %v3641_v18, 0.0 }
 0x264   : > { %v1847_v19 = vmul.f32 %v3660_v21, %v3660_v21 }
 0x265   : > { %v1731_v44 = vadd.f32 %v1730_v55, %v1729_v36  ;;  %v1900_v35 = vadd.f32 %v1899_v63, %v1898_v46  ;;  %v1907_v55 = vsel %vm1600_vm0, %v1827_v2, 0.0  ;;  %v1915_v46 = vsel %vm1600_vm0, %v1831_v3, 0.0 }
 0x267   : > { %v1733_v51 = vadd.f32 %v1732_v34, %v1731_v44  ;;  %v1902_v62 = vadd.f32 %v1901_v41, %v1900_v35  ;;  %v1746_v34 = vsel %vm1600_vm0, %v3660_v21, 0.0  ;;  %v1917_v35 = vsel %vm1600_vm0, %v1832_v59, 0.0 }
 0x268   : > { %v1849_v21 = vmul.f32 %v3682_v23, %v3682_v23 }
 0x269   : > { %v1735_v0 = vadd.f32 %v1734_v32, %v1733_v51  ;;  %v1904_v53 = vadd.f32 %v1903_v42, %v1902_v62  ;;  %v1913_v51 = vsel %vm1600_vm0, %v1830_v45, 0.0  ;;  %v1919_v62 = vsel %vm1600_vm0, %v1833_v5, 0.0 }
 0x26b   : > { %v1737_v27 = vadd.f32 %v1736_v57, %v1735_v0  ;;  %v1906_v36 = vadd.f32 %v1905_v38, %v1904_v53  ;;  %v4617_v0 = vld [vmem:[#allocation22_spill] sm:$0xff]  ;;  %v1921_v53 = vsel %vm1600_vm0, %v1834_v60, 0.0 }
 0x26c   : > { %v1752_v50 = vsel %vm1600_vm0, %v4617_v0, 0.0  ;;  %v1850_v18 = vmul.f32 %v4617_v0, %v4617_v0 }
 0x26d   : > { %v1739_v30 = vadd.f32 %v1738_v58, %v1737_v27  ;;  %v1908_v47 = vadd.f32 %v1907_v55, %v1906_v36  ;;  %v4618_v27 = vld [vmem:[#allocation24_spill] sm:$0xff]  ;;  %v1923_v36 = vsel %vm1600_vm0, %v1835_v7, 0.0 }
 0x26e   : > { %v1754_v2 = vsel %vm1600_vm0, %v4618_v27, 0.0  ;;  %v1851_v23 = vmul.f32 %v4618_v27, %v4618_v27 }
 0x26f   : > { %v1741_v29 = vadd.f32 %v1740_v61, %v1739_v30  ;;  %v1910_v32 = vadd.f32 %v1909_v39, %v1908_v47  ;;  %v4619_v30 = vld [vmem:[#allocation19_spill] sm:$0xff]  ;;  %v1925_v47 = vsel %vm1600_vm0, %v1836_v4, 0.0 }
 0x270   : > { %v1756_v37 = vsel %vm1600_vm0, %v4619_v30, 0.0  ;;  %v1852_v0 = vmul.f32 %v4619_v30, %v4619_v30 }
 0x271   : > { %v1743_v49 = vadd.f32 %v1742_v28, %v1741_v29  ;;  %v1912_v63 = vadd.f32 %v1911_v54, %v1910_v32  ;;  %v4620_v29 = vld [vmem:[#allocation26_spill] sm:$0xff]  ;;  %v1927_v32 = vsel %vm1600_vm0, %v1837_v9, 0.0 }
 0x272   : > { %v1758_v1 = vsel %vm1600_vm0, %v4620_v29, 0.0  ;;  %v1853_v27 = vmul.f32 %v4620_v29, %v4620_v29 }
 0x273   : > { %v1745_v44 = vadd.f32 %v1744_v25, %v1743_v49  ;;  %v1914_v41 = vadd.f32 %v1913_v51, %v1912_v63  ;;  %v4621_v49 = vld [vmem:[#allocation21_spill] sm:$0xff]  ;;  %v1929_v63 = vsel %vm1600_vm0, %v1838_v6, 0.0 }
 0x274   : > { %v1760_v45 = vsel %vm1600_vm0, %v4621_v49, 0.0  ;;  %v1854_v30 = vmul.f32 %v4621_v49, %v4621_v49 }
 0x275   : > { %v1747_v52 = vadd.f32 %v1746_v34, %v1745_v44  ;;  %v1916_v42 = vadd.f32 %v1915_v46, %v1914_v41  ;;  %v4622_v44 = vld [vmem:[#allocation28_spill] sm:$0xff]  ;;  %v1931_v41 = vsel %vm1600_vm0, %v1839_v11, 0.0 }
 0x276   : > { %v1762_v3 = vsel %vm1600_vm0, %v4622_v44, 0.0  ;;  %v1855_v29 = vmul.f32 %v4622_v44, %v4622_v44 }
 0x277   : > { %v1749_v57 = vadd.f32 %v1748_v33, %v1747_v52  ;;  %v1918_v38 = vadd.f32 %v1917_v35, %v1916_v42  ;;  %v4623_v52 = vld [vmem:[#allocation23_spill] sm:$0xff]  ;;  %v1933_v42 = vsel %vm1600_vm0, %v1840_v8, 0.0 }
 0x278   : > { %v1764_v59 = vsel %vm1600_vm0, %v4623_v52, 0.0  ;;  %v1856_v49 = vmul.f32 %v4623_v52, %v4623_v52 }
 0x279   : > { %v1751_v58 = vadd.f32 %v1750_v56, %v1749_v57  ;;  %v1920_v55 = vadd.f32 %v1919_v62, %v1918_v38  ;;  %v4624_v57 = vld [vmem:[#allocation30_spill] sm:$0xff]  ;;  %v1935_v38 = vsel %vm1600_vm0, %v1841_v13, 0.0 }
 0x27a   : > { %v1766_v5 = vsel %vm1600_vm0, %v4624_v57, 0.0  ;;  %v1857_v44 = vmul.f32 %v4624_v57, %v4624_v57 }
 0x27b   : > { %v1753_v61 = vadd.f32 %v1752_v50, %v1751_v58  ;;  %v1922_v39 = vadd.f32 %v1921_v53, %v1920_v55  ;;  %v4625_v58 = vld [vmem:[#allocation25_spill] sm:$0xff]  ;;  %v1937_v55 = vsel %vm1600_vm0, %v1842_v10, 0.0 }
 0x27c   : > { %v1768_v60 = vsel %vm1600_vm0, %v4625_v58, 0.0 }
 0x27d   : > { %v1755_v28 = vadd.f32 %v1754_v2, %v1753_v61  ;;  %v1924_v54 = vadd.f32 %v1923_v36, %v1922_v39  ;;  %v4626_v61 = vld [vmem:[#allocation32_spill] sm:$0xff]  ;;  %v1939_v39 = vsel %vm1600_vm0, %v1843_v15, 0.0 }
 0x27e   : > { %v1770_v7 = vsel %vm1600_vm0, %v4626_v61, 0.0 }
 0x27f   : > { %v1757_v25 = vadd.f32 %v1756_v37, %v1755_v28  ;;  %v1926_v51 = vadd.f32 %v1925_v47, %v1924_v54  ;;  %v4627_v28 = vld [vmem:[#allocation27_spill] sm:$0xff]  ;;  %v1941_v54 = vsel %vm1600_vm0, %v1844_v12, 0.0  ;;  %v1953_v12 = vsel %vm1600_vm0, %v1850_v18, 0.0 }
 0x280   : > { %v1772_v4 = vsel %vm1600_vm0, %v4627_v28, 0.0  ;;  %v1860_v57 = vmul.f32 %v4627_v28, %v4627_v28 }
 0x281   : > { %v1759_v34 = vadd.f32 %v1758_v1, %v1757_v25  ;;  %v1928_v46 = vadd.f32 %v1927_v32, %v1926_v51  ;;  %v4628_v25 = vld [vmem:[#allocation34_spill] sm:$0xff]  ;;  %v1943_v51 = vsel %vm1600_vm0, %v1845_v17, 0.0  ;;  %v1792_v17 = vsel %vm1600_vm0, %v3881_v26, 0.0 }
 0x282   : > { %v1774_v9 = vsel %vm1600_vm0, %v4628_v25, 0.0 }
 0x283   : > { %v1761_v33 = vadd.f32 %v1760_v45, %v1759_v34  ;;  %v1930_v35 = vadd.f32 %v1929_v63, %v1928_v46  ;;  %v4629_v34 = vld [vmem:[#allocation29_spill] sm:$0xff]  ;;  %v1945_v46 = vsel %vm1600_vm0, %v1846_v14, 0.0 }
 0x284   : > { %v1776_v6 = vsel %vm1600_vm0, %v4629_v34, 0.0 }
 0x285   : > { %v1763_v56 = vadd.f32 %v1762_v3, %v1761_v33  ;;  %v1932_v62 = vadd.f32 %v1931_v41, %v1930_v35  ;;  %v4630_v33 = vld [vmem:[#allocation36_spill] sm:$0xff]  ;;  %v4632_v35 = vld [vmem:[#allocation33_spill] sm:$0xff] }
 0x286   : > { %v1778_v11 = vsel %vm1600_vm0, %v4630_v33, 0.0 }
 0x287   : > { %v1765_v50 = vadd.f32 %v1764_v59, %v1763_v56  ;;  %v1934_v53 = vadd.f32 %v1933_v42, %v1932_v62  ;;  %v4631_v56 = vld [vmem:[#allocation31_spill] sm:$0xff]  ;;  %v1786_v62 = vsel %vm1600_vm0, %v3878_v24, 0.0 }
 0x288   : > { %v1780_v8 = vsel %vm1600_vm0, %v4631_v56, 0.0 }
 0x289   : > { %v1767_v2 = vadd.f32 %v1766_v5, %v1765_v50  ;;  %v1936_v36 = vadd.f32 %v1935_v38, %v1934_v53  ;;  %v1782_v50 = vsel %vm1600_vm0, %v3858_v22, 0.0  ;;  %v1951_v38 = vsel %vm1600_vm0, %v1849_v21, 0.0 }
 0x28b   : > { %v1769_v37 = vadd.f32 %v1768_v60, %v1767_v2  ;;  %v1938_v47 = vadd.f32 %v1937_v55, %v1936_v36  ;;  %v1947_v60 = vsel %vm1600_vm0, %v1847_v19, 0.0  ;;  %v1784_v2 = vsel %vm1600_vm0, %v4632_v35, 0.0 }
 0x28c   : > { %v1790_v55 = vsel %vm1600_vm0, %v3896_v31, 0.0 }
 0x28d   : > { %v1771_v1 = vadd.f32 %v1770_v7, %v1769_v37  ;;  %v1940_v32 = vadd.f32 %v1939_v39, %v1938_v47  ;;  %v1949_v7 = vsel %vm1600_vm0, %v1848_v16, 0.0  ;;  %v1957_v47 = vsel %vm1600_vm0, %v1852_v0, 0.0  ;;  %v1672_v0 = vld [vmem:[%s3924_s14] sm:$0x1] }
 0x28e   : > { %v1963_v16 = vsel %vm1600_vm0, %v1855_v29, 0.0 }
 0x28f   : > { %v1773_v45 = vadd.f32 %v1772_v4, %v1771_v1  ;;  %v1942_v63 = vadd.f32 %v1941_v54, %v1940_v32  ;;  %v1788_v4 = vsel %vm1600_vm0, %v3861_v48, 0.0  ;;  %v1796_v32 = vsel %vm1600_vm0, %v3899_v40, 0.0 }
 0x291   : > { %v1775_v3 = vadd.f32 %v1774_v9, %v1773_v45  ;;  %v1944_v13 = vadd.f32 %v1943_v51, %v1942_v63  ;;  %v1955_v45 = vsel %vm1600_vm0, %v1851_v23, 0.0  ;;  %v1961_v51 = vsel %vm1600_vm0, %v1854_v30, 0.0 }
 0x292   : > { %v1862_v23 = vmul.f32 %v4629_v34, %v4629_v34  ;;  %v1864_v34 = vmul.f32 %v4631_v56, %v4631_v56 }
 0x293   : > { %v1777_v59 = vadd.f32 %v1776_v6, %v1775_v3  ;;  %v1946_v10 = vadd.f32 %v1945_v46, %v1944_v13  ;;  %v1794_v3 = vsel %vm1600_vm0, %v3911_v20, 0.0  ;;  %v1858_v13 = vmul.f32 %v4625_v58, %v4625_v58 }
 0x295   : > { %v1779_v5 = vadd.f32 %v1778_v11, %v1777_v59  ;;  %v1948_v37 = vadd.f32 %v1947_v60, %v1946_v10  ;;  %v1959_v11 = vsel %vm1600_vm0, %v1853_v27, 0.0  ;;  %v1859_v60 = vmul.f32 %v4626_v61, %v4626_v61 }
 0x296   : > { %v1969_v18 = vsel %vm1600_vm0, %v1858_v13, 0.0 }
 0x297   : > { %v1781_v41 = vadd.f32 %v1780_v8, %v1779_v5  ;;  %v1950_v53 = vadd.f32 %v1949_v7, %v1948_v37  ;;  %v1798_v8 = vsel %vm1600_vm0, %v3918_v43, 0.0  ;;  %v1971_v37 = vsel %vm1600_vm0, %v1859_v60, 0.0 }
 0x299   : > { %v1783_v42 = vadd.f32 %v1782_v50, %v1781_v41  ;;  %v1952_v9 = vadd.f32 %v1951_v38, %v1950_v53  ;;  %v1965_v41 = vsel %vm1600_vm0, %v1856_v49, 0.0  ;;  %v1973_v38 = vsel %vm1600_vm0, %v1860_v57, 0.0 }
 0x29a   : > { %v1863_v53 = vmul.f32 %v4630_v33, %v4630_v33  ;;  %v1865_v33 = vmul.f32 %v3858_v22, %v3858_v22  ;;  %v1981_v22 = vsel %vm1600_vm0, %v1864_v34, 0.0 }
 0x29b   : > { %v1785_v15 = vadd.f32 %v1784_v2, %v1783_v42  ;;  %v1954_v39 = vadd.f32 %v1953_v12, %v1952_v9  ;;  %v1967_v2 = vsel %vm1600_vm0, %v1857_v44, 0.0 }
 0x29c   : > { %v1979_v27 = vsel %vm1600_vm0, %v1863_v53, 0.0 }
 0x29d   : > { %v1787_v1 = vadd.f32 %v1786_v62, %v1785_v15  ;;  %v1956_v14 = vadd.f32 %v1955_v45, %v1954_v39  ;;  %v1861_v62 = vmul.f32 %v4628_v25, %v4628_v25  ;;  %v1866_v45 = vmul.f32 %v4632_v35, %v4632_v35 }
 0x29f   : > { %v1789_v36 = vadd.f32 %v1788_v4, %v1787_v1  ;;  %v1958_v59 = vadd.f32 %v1957_v47, %v1956_v14  ;;  %v1975_v1 = vsel %vm1600_vm0, %v1861_v62, 0.0 }
 0x2a1   : > { %v1791_v6 = vadd.f32 %v1790_v55, %v1789_v36  ;;  %v1960_v63 = vadd.f32 %v1959_v11, %v1958_v59  ;;  %v1977_v55 = vsel %vm1600_vm0, %v1862_v23, 0.0 }
 0x2a3   : > { %v1793_v54 = vadd.f32 %v1792_v17, %v1791_v6  ;;  %v1962_v46 = vadd.f32 %v1961_v51, %v1960_v63 }
 0x2a5   : > { %v1795_v19 = vadd.f32 %v1794_v3, %v1793_v54  ;;  %v1964_v52 = vadd.f32 %v1963_v16, %v1962_v46 }
 0x2a7   : > { %v1797_v5 = vadd.f32 %v1796_v32, %v1795_v19  ;;  %v1966_v10 = vadd.f32 %v1965_v41, %v1964_v52 }
 0x2a9   : > { %v1799_v50 = vadd.f32 %v1798_v8, %v1797_v5  ;;  %v1968_v58 = vadd.f32 %v1967_v2, %v1966_v10 }
 0x2ab   : > { %v1800_v21 = vrot.slane %v1799_v50, 4  ;;  %v1970_v61 = vadd.f32 %v1969_v18, %v1968_v58 }
 0x2ad   : > { %v1801_v42 = vadd.f32 %v1800_v21, %v1799_v50  ;;  %v1972_v4 = vadd.f32 %v1971_v37, %v1970_v61 }
 0x2af   : > { %v1802_v7 = vrot.slane %v1801_v42, 2  ;;  %v1974_v25 = vadd.f32 %v1973_v38, %v1972_v4 }
 0x2b1   : > { %v1803_v15 = vadd.f32 %v1802_v7, %v1801_v42  ;;  %v1976_v9 = vadd.f32 %v1975_v1, %v1974_v25 }
 0x2b3   : > { %v1804_v28 = vrot.slane %v1803_v15, 1  ;;  %v1978_v56 = vadd.f32 %v1977_v55, %v1976_v9 }
 0x2b5   : > { %v1805_v12 = vadd.f32 %v1804_v28, %v1803_v15  ;;  %v1980_v17 = vadd.f32 %v1979_v27, %v1978_v56 }
 0x2b7   : > { %v1806_v36 = vadd.f32 %v1805_v12, %v1672_v0 }
 0x2b9   : > { %1808 = vst.msk [vmem:[%s3924_s14] sm:$0x1] %vm1807_vm2, %v1806_v36 }
 0x2ba   : > { %2318 = shalt.err (!%p2315_p8)
}
 0x2bb   : > { %s2319_s14 = scalar_lea.hbm %s4234_s8, 16  ;;  %s2323_s12 = scalar_lea.hbm %s4355_s4, 32 }
 0x2bc   : > { %p2320_p10 = scmp.ne.s32.totalorder %s4234_s8, %s2319_s14  ;;  %p2324_p13 = scmp.lt.u32.totalorder %s4234_s8, %s4355_s4 }
 0x2bd   : > { %p2325_p0 = scmp.lt.u32.totalorder %s2323_s12, %s2319_s14  ;;  %p2327_p2 = scmp.lt.u32.totalorder %s2319_s14, %s4234_s8 }
 0x2be   : > { %p2321_p11 = pnand %p2320_p10, %p2518_p3 }
 0x2bf   : > { %p2326_p1 = por %p2325_p0, %p2324_p13 }
 0x2c0   : > { %p2322_p12 = pneg %p2321_p11 }
 0x2c1   : > { %p2328_p4 = por %p2327_p2, %p2326_p1 }
 0x2c3   : > { %p2329_p5 = pnand %p2328_p4, %p2322_p12 }
 0x2c5   : > { %2332 = shalt.err (!%p2329_p5)
}
 0x2c6   : > { %2219 = dma.vmem_to_hbm [thread:$0]  (%p2518_p3), %s4236_s26, 16, %s4234_s8, %s2019_s10   ;;  %v1867_v35 = vmul.f32 %v3878_v24, %v3878_v24  ;;  %v1983_v39 = vsel %vm1600_vm0, %v1865_v33, 0.0  ;;  %v1982_v6 = vadd.f32 %v1981_v22, %v1980_v17  ;;  %v1868_v30 = vmul.f32 %v3861_v48, %v3861_v48 }
 0x2c7   : > { %v1985_v47 = vsel %vm1600_vm0, %v1866_v45, 0.0  ;;  %v1869_v14 = vmul.f32 %v3896_v31, %v3896_v31  ;;  %v1870_v11 = vmul.f32 %v3881_v26, %v3881_v26  ;;  %v1871_v59 = vmul.f32 %v3911_v20, %v3911_v20  ;;  %s2052_s21 = sshll.u32 %s3927_s17, 4  ;;  %s4633_s26 = sshll.u32 %s2419_s22, 4  ;;  %s4297_s21 = int_to_ptr.vmem [resolvable:$true] %s2052_s21 }
 0x2c8   : > { %v1984_v3 = vadd.f32 %v1983_v39, %v1982_v6  ;;  %v1987_v54 = vsel %vm1600_vm0, %v1867_v35, 0.0  ;;  %v1989_v24 = vsel %vm1600_vm0, %v1868_v30, 0.0  ;;  %v1872_v49 = vmul.f32 %v3899_v40, %v3899_v40  ;;  %s4295_s11 = scalar_lea.hbm %s4356_s5, %s4633_s26  ;;  %s2023_s16 = scalar_lea.sflag [#allocation5], %s3251_s13 }
 0x2c9   : > { %v1991_v48 = vsel %vm1600_vm0, %v1869_v14, 0.0  ;;  %v1993_v31 = vsel %vm1600_vm0, %v1870_v11, 0.0  ;;  %v1873_v26 = vmul.f32 %v3918_v43, %v3918_v43  ;;  %v1995_v8 = vsel %vm1600_vm0, %v1871_v59, 0.0  ;;  %v1809_v43 = vld [vmem:[%s3927_s17] sm:$0x1]  ;;  %s2333_s14 = scalar_lea.vmem %s4297_s21, 16 }
 0x2ca   : > { %v1986_v29 = vadd.f32 %v1985_v47, %v1984_v3  ;;  %v1997_v20 = vsel %vm1600_vm0, %v1872_v49, 0.0  ;;  %p2334_p6 = scmp.ne.s32.totalorder %s4297_s21, %s2333_s14  ;;  %s2438_s27 = smov [#allocation4]  }
 0x2cb   : > { %v1999_v44 = vsel %vm1600_vm0, %v1873_v26, 0.0  ;;  %s2337_s22 = sshll.u32 %s2438_s27, 4  ;;  %s2338_s22 = int_to_ptr.vmem [resolvable:$false] %s2337_s22 }
 0x2cc   : > { %v1988_v32 = vadd.f32 %v1987_v54, %v1986_v29  ;;  %p2335_p7 = pnand %p2334_p6, %p2518_p3  ;;  %s2339_s7 = scalar_lea.vmem %s2338_s22, 32 }
 0x2cd   : > { %p2340_p10 = scmp.lt.s32.totalorder %s4297_s21, %s2338_s22  ;;  %p2341_p11 = scmp.lt.s32.totalorder %s2339_s7, %s2333_s14 }
 0x2ce   : > { %v1990_v19 = vadd.f32 %v1989_v24, %v1988_v32  ;;  %p2336_p8 = pneg %p2335_p7 }
 0x2cf   : > { %p2342_p12 = por %p2341_p11, %p2340_p10 }
 0x2d0   : > { %v1992_v51 = vadd.f32 %v1991_v48, %v1990_v19 }
 0x2d1   : > { %p2343_p13 = pnand %p2342_p12, %p2336_p8 }
 0x2d2   : > { %v1994_v63 = vadd.f32 %v1993_v31, %v1992_v51 }
 0x2d4   : > { %v1996_v5 = vadd.f32 %v1995_v8, %v1994_v63 }
 0x2d6   : > { %v1998_v40 = vadd.f32 %v1997_v20, %v1996_v5 }
 0x2d8   : > { %v2000_v16 = vadd.f32 %v1999_v44, %v1998_v40 }
 0x2da   : > { %v2001_v46 = vrot.slane %v2000_v16, 4 }
 0x2dc   : > { %v2002_v50 = vadd.f32 %v2001_v46, %v2000_v16 }
 0x2de   : > { %v2003_v13 = vrot.slane %v2002_v50, 2 }
 0x2e0   : > { %v2004_v41 = vadd.f32 %v2003_v13, %v2002_v50 }
 0x2e2   : > { %v2005_v52 = vrot.slane %v2004_v41, 1 }
 0x2e4   : > { %v2006_v21 = vadd.f32 %v2005_v52, %v2004_v41 }
 0x2e6   : > { %v2007_v60 = vadd.f32 %v2006_v21, %v1809_v43 }
 0x2e8   : > { %2008 = vst.msk [vmem:[%s3927_s17] sm:$0x1] %vm1807_vm2, %v2007_v60 }
 0x2e9   : > { %2346 = shalt.err (!%p2343_p13)
}
 0x2ea   : > { %s2347_s13 = scalar_lea.hbm %s4295_s11, 16  ;;  %s2351_s15 = scalar_lea.hbm %s4356_s5, 32 }
 0x2eb   : > { %p2348_p0 = scmp.ne.s32.totalorder %s4295_s11, %s2347_s13  ;;  %p2352_p4 = scmp.lt.u32.totalorder %s4295_s11, %s4356_s5 }
 0x2ec   : > { %p2353_p5 = scmp.lt.u32.totalorder %s2351_s15, %s2347_s13  ;;  %p2355_p7 = scmp.lt.u32.totalorder %s2347_s13, %s4295_s11 }
 0x2ed   : > { %p2349_p1 = pnand %p2348_p0, %p2518_p3 }
 0x2ee   : > { %p2354_p6 = por %p2353_p5, %p2352_p4 }
 0x2ef   : > { %p2350_p2 = pneg %p2349_p1 }
 0x2f0   : > { %p2356_p8 = por %p2355_p7, %p2354_p6 }
 0x2f2   : > { %p2357_p10 = pnand %p2356_p8, %p2350_p2 }
 0x2f4   : > { %2360 = shalt.err (!%p2357_p10)
}
 0x2f5   : > { %2220 = dma.vmem_to_hbm [thread:$0]  (%p2518_p3), %s4297_s21, 16, %s4295_s11, %s2023_s16  }
 0x2f6 PF: > { %p2230_p11 = scmp.ge.s32.totalorder %s2431_s25, 2  ;;  %s2076_s10 = sand.u32 1, %s2403_s18  }
 0x2f7   : > { %s2077_s14 = scalar_lea.sflag [#allocation3], %s2076_s10 }
 0x2f8   : > { %p2224_p12 = pnand %p2230_p11, %p2528_p9 }
 0x2fa   : > { %2394 = dma.done.wait (!%p2224_p12), %s2077_s14, 16  }
 0x2fb   : > { %2396 = vsyncadd (!%p2224_p12), %s2077_s14, 4294967280  ;;  %s2085_s27 = scalar_lea.sflag [#allocation5], %s2076_s10 }
 0x2fc   : > { %2398 = dma.done.wait (!%p2224_p12), %s2085_s27, 16  }
 0x2fd   : > { %2400 = vsyncadd (!%p2224_p12), %s2085_s27, 4294967280  ;;  %s22_s25 = sadd.s32 1, %s2431_s25   ;;  %s4634_s18 = smov %s2407_s19 }
 0x2fe   : > { %p19_p13 = scmp.ge.s32.totalorder %s22_s25, 6   ;;  %s4635_s19 = smov %s2411_s20 }
 0x2ff   : > { %s4636_s20 = smov %s2536_s9  ;;  %s4637_s21 = smov %s2423_s23 }
 0x300   : > { %s4638_s22 = smov %s2427_s24  ;;  %s4639_s23 = smov %s4642_s28 }
 0x301   : > { %s4640_s24 = smov %s4646_s29  ;;  %21 = sbr.rel (!%p19_p13) target bundleno = 7 (0x7), region = 103 }
 0x308   :  { %2089 = vsyncpa [#allocation3], 1 }
 0x309   :  { %2091 = vsyncpa [#allocation3 + $0x1], 1 }
 0x30a   :  { %2092 = vsyncpa [#allocation5], 1 }
 0x30b   :  { %2094 = vsyncpa [#allocation5 + $0x1], 1 }

</bundles_post_ra>
